<compile_context>
chip_gen: v5e
topology: v5e:2x2
jax: 0.10.0
libtpu: 0.0.40
codegen_flags: <defaults>
</compile_context>

<pallas_src>
import jax
import jax.numpy as jnp
from jax.experimental import pallas as pl
from jax.experimental.pallas import tpu as pltpu

CROP = 96  # MouthPreprocessor / write_lossless_video use 96x96 mouth crops


def mouth_crop_kernel(x_ref, o_ref):
    # x_ref: (TB, 3, 96, 96) uint8   o_ref: (TB, 96, 96) uint8
    # Widen each channel on the VPU (input stays uint8 across HBM->VMEM).
    r = x_ref[:, 0, :, :].astype(jnp.float32)
    g = x_ref[:, 1, :, :].astype(jnp.float32)
    b = x_ref[:, 2, :, :].astype(jnp.float32)
    # RGB -> grayscale (ITU-R BT.601 weights), pure VPU elementwise work.
    gray = 0.299 * r + 0.587 * g + 0.114 * b                 # (TB, 96, 96) f32
    # Round (+0.5 & truncate), clip, and store uint8 directly from the kernel.
    o_ref[...] = jnp.clip(gray + 0.5, 0.0, 255.0).astype(jnp.uint8)


def video_loader_forward(video_u8, frames_per_step=32):
    """video_u8: (T, H, W, 3) uint8 frames -> (T, CROP, CROP, 1) uint8."""
    T, H, W, C = video_u8.shape
    assert C == 3
    assert H >= CROP and W >= CROP

    # Glue (all in uint8, on already-cropped data):
    #   1) fixed center crop (stand-in for the tracked mouth ROI),
    #   2) THWC -> TCHW so (H, W) land on the TPU (sublane, lane) axes.
    h0 = (H - CROP) // 2
    w0 = (W - CROP) // 2
    cropped = video_u8[:, h0:h0 + CROP, w0:w0 + CROP, :]      # (T, 96, 96, 3) u8
    x = jnp.transpose(cropped, (0, 3, 1, 2))                  # (T, 3, 96, 96) u8

    # Batch frames per grid step; pad T to a multiple of the batch.
    tb = max(1, min(frames_per_step, T))
    n_steps = pl.cdiv(T, tb)
    t_pad = n_steps * tb
    if t_pad != T:
        x = jnp.pad(x, ((0, t_pad - T), (0, 0), (0, 0), (0, 0)))

    gray = pl.pallas_call(
        mouth_crop_kernel,
        out_shape=jax.ShapeDtypeStruct((t_pad, CROP, CROP), jnp.uint8),
        grid_spec=pltpu.PrefetchScalarGridSpec(
            num_scalar_prefetch=0,
            grid=(n_steps,),
            in_specs=[pl.BlockSpec((tb, 3, CROP, CROP), lambda t: (t, 0, 0, 0))],
            out_specs=pl.BlockSpec((tb, CROP, CROP), lambda t: (t, 0, 0)),
        ),
        compiler_params=pltpu.CompilerParams(
            dimension_semantics=("parallel",)),   # v7x: both TCs split T
    )(x)

    # Module's `video.unsqueeze(-1)` for 3-D input (drop any T padding first).
    video = gray[:T, :, :, None]                               # (T, 96, 96, 1) u8
    return video


if __name__ == "__main__":
    key = jax.random.PRNGKey(0)
    T, H, W = 4, 128, 128  # small synthetic "decoded video": 4 RGB frames 128x128
    frames = jax.random.randint(key, (T, H, W, 3), 0, 256, dtype=jnp.int32)
    frames = frames.astype(jnp.uint8)

    out = video_loader_forward(frames)
    out = jax.block_until_ready(out)

    assert out.shape == (T, CROP, CROP, 1), out.shape
    assert out.dtype == jnp.uint8, out.dtype

    # Reference check (same crop + BT.601 weights, computed in plain XLA).
    h0 = (H - CROP) // 2
    w0 = (W - CROP) // 2
    crop_f = frames[:, h0:h0 + CROP, w0:w0 + CROP, :].astype(jnp.float32)
    ref = (0.299 * crop_f[..., 0] + 0.587 * crop_f[..., 1] + 0.114 * crop_f[..., 2])
    ref = jnp.clip(ref + 0.5, 0.0, 255.0).astype(jnp.uint8)[..., None]
    diff = jnp.max(jnp.abs(out.astype(jnp.int32) - ref.astype(jnp.int32)))
    assert int(diff) <= 1, int(diff)

    print("KERNEL_OK")
</pallas_src>

<mosaic_0001>
module attributes {stable_mosaic.version = 11 : i64} {
  func.func @mouth_crop_kernel(%arg0: i32, %arg1: memref<4x3x96x96xi8, #tpu.memory_space<vmem>>, %arg2: memref<4x96x96xi8, #tpu.memory_space<vmem>>) attributes {dimension_semantics = [#tpu.dimension_semantics<parallel>], iteration_bounds = array<i64: 1>, scalar_prefetch = 0 : i64, scratch_operands = 0 : i64, tpu.core_type = #tpu.core_type<tc>, window_params = [{transform_indices = @transform_0, window_bounds = array<i64: 4, 3, 96, 96>}, {transform_indices = @transform_1, window_bounds = array<i64: 4, 96, 96>}]} {
    %c0 = arith.constant 0 : index
    %c0_0 = arith.constant 0 : index
    %c0_1 = arith.constant 0 : index
    %c0_2 = arith.constant 0 : index
    %0 = vector.load %arg1[%c0, %c0_0, %c0_1, %c0_2] : memref<4x3x96x96xi8, #tpu.memory_space<vmem>>, vector<4x1x96x96xi8>
    %1 = vector.shape_cast %0 : vector<4x1x96x96xi8> to vector<4x96x96xi8>
    %2 = arith.uitofp %1 : vector<4x96x96xi8> to vector<4x96x96xf32>
    %c0_3 = arith.constant 0 : index
    %c1 = arith.constant 1 : index
    %c0_4 = arith.constant 0 : index
    %c0_5 = arith.constant 0 : index
    %3 = vector.load %arg1[%c0_3, %c1, %c0_4, %c0_5] : memref<4x3x96x96xi8, #tpu.memory_space<vmem>>, vector<4x1x96x96xi8>
    %4 = vector.shape_cast %3 : vector<4x1x96x96xi8> to vector<4x96x96xi8>
    %5 = arith.uitofp %4 : vector<4x96x96xi8> to vector<4x96x96xf32>
    %c0_6 = arith.constant 0 : index
    %c2 = arith.constant 2 : index
    %c0_7 = arith.constant 0 : index
    %c0_8 = arith.constant 0 : index
    %6 = vector.load %arg1[%c0_6, %c2, %c0_7, %c0_8] : memref<4x3x96x96xi8, #tpu.memory_space<vmem>>, vector<4x1x96x96xi8>
    %7 = vector.shape_cast %6 : vector<4x1x96x96xi8> to vector<4x96x96xi8>
    %8 = arith.uitofp %7 : vector<4x96x96xi8> to vector<4x96x96xf32>
    %cst = arith.constant 2.990000e-01 : f32
    %9 = vector.broadcast %cst : f32 to vector<4x96x96xf32>
    %10 = arith.mulf %9, %2 : vector<4x96x96xf32>
    %cst_9 = arith.constant 5.870000e-01 : f32
    %11 = vector.broadcast %cst_9 : f32 to vector<4x96x96xf32>
    %12 = arith.mulf %11, %5 : vector<4x96x96xf32>
    %13 = arith.addf %10, %12 : vector<4x96x96xf32>
    %cst_10 = arith.constant 1.140000e-01 : f32
    %14 = vector.broadcast %cst_10 : f32 to vector<4x96x96xf32>
    %15 = arith.mulf %14, %8 : vector<4x96x96xf32>
    %16 = arith.addf %13, %15 : vector<4x96x96xf32>
    %cst_11 = arith.constant 5.000000e-01 : f32
    %17 = vector.broadcast %cst_11 : f32 to vector<4x96x96xf32>
    %18 = arith.addf %16, %17 : vector<4x96x96xf32>
    %cst_12 = arith.constant 0.000000e+00 : f32
    %cst_13 = arith.constant 2.550000e+02 : f32
    %19 = vector.broadcast %cst_12 : f32 to vector<4x96x96xf32>
    %20 = arith.maximumf %19, %18 : vector<4x96x96xf32>
    %21 = vector.broadcast %cst_13 : f32 to vector<4x96x96xf32>
    %22 = arith.minimumf %21, %20 : vector<4x96x96xf32>
    %23 = arith.fptoui %22 : vector<4x96x96xf32> to vector<4x96x96xi8>
    %c0_14 = arith.constant 0 : index
    %c0_15 = arith.constant 0 : index
    %c0_16 = arith.constant 0 : index
    %24 = vector.load %arg2[%c0_14, %c0_15, %c0_16] : memref<4x96x96xi8, #tpu.memory_space<vmem>>, vector<4x96x96xi8>
    tpu.vector_store %arg2[%c0_14, %c0_15, %c0_16], %23 {strides = array<i32>} : memref<4x96x96xi8, #tpu.memory_space<vmem>>, vector<4x96x96xi8>,
    return
  }
  func.func @transform_0(%arg0: i32) -> (i32, i32, i32, i32) {
    %c0_i32 = arith.constant 0 : i32
    %c0_i32_0 = arith.constant 0 : i32
    %c0_i32_1 = arith.constant 0 : i32
    %c0_i32_2 = arith.constant 0 : i32
    return %arg0, %c0_i32, %c0_i32_0, %c0_i32_1 : i32, i32, i32, i32
  }
  func.func @transform_1(%arg0: i32) -> (i32, i32, i32) {
    %c0_i32 = arith.constant 0 : i32
    %c0_i32_0 = arith.constant 0 : i32
    %c0_i32_1 = arith.constant 0 : i32
    return %arg0, %c0_i32, %c0_i32_0 : i32, i32, i32
  }
}

</mosaic_0001>

<bundles_post_ra>
// kernel: tpu_custom_call.1
= control target key start
LH: loop header
LB: loop body
LE: loop exit
PB: predicated region body
PF: predicated region fallthrough
CT: control target
= control target key end

     0   :  { %6 = vsyncpa [#allocation3], 0  ;;  %s3194_s0 = inlined_call_operand.hbm [shape: u8[4,3,96,96], index: 0, kind: input, shape index: {}]   ;;  %s3195_s1 = inlined_call_operand.hbm [shape: u8[4,96,96], index: 1, kind: output, shape index: {}]  }
   0x1   :  { %7 = vsyncpa [#allocation4], 0  ;;  %s12_s8 = sshll.u32 %s3194_s0, 4  ;;  %s1435_s9 = smov [#allocation2]   ;;  %s13_s8 = int_to_ptr.hbm [resolvable:$true] %s12_s8 }
   0x2   :  { %s14_s10 = sshll.u32 %s1435_s9, 4  ;;  %s1436_s11 = smov 128   ;;  %s15_s10 = int_to_ptr.vmem [resolvable:$true] %s14_s10 }
   0x3   :  { %s1437_s12 = smov 8  }
   0x4   :  { %20 = dma.hbm_to_vmem [thread:$0]  %s13_s8, 4608, %s15_s10, [#allocation3], %s1436_s11, %s1436_s11, %s1437_s12  }
   0x5   :  { %1431 = dma.done.wait [#allocation3], 4608  }
   0x6   :  { %1432 = vsyncadd [#allocation3], 4294962688  ;;  %v1455_v0 = vld [vmem:[#allocation2] sm:$0xff]  ;;  %v1457_v1 = vld [vmem:[#allocation2 + $0x8] sm:$0xff]  ;;  %s1438_s0 = smov [#allocation5]   ;;  %s1078_s16 = sshll.u32 %s3195_s1, 4  ;;  %s1079_s16 = int_to_ptr.hbm [resolvable:$true] %s1078_s16 }
   0x7   :  { %v1459_v2 = vld [vmem:[#allocation2 + $0x10] sm:$0xff]  ;;  %v1461_v3 = vld [vmem:[#allocation2 + $0x48] sm:$0xff]  ;;  %v37_v4 = vunpack.c.0.s8 %v1455_v0  ;;  %v38_v6 = vunpack.c.1.s8 %v1455_v0  ;;  %v39_v7 = vunpack.c.2.s8 %v1455_v0  ;;  %v40_v8 = vunpack.c.3.s8 %v1455_v0  ;;  %v1470_v10 = vld [vmem:[#allocation2 + $0x58] sm:$0xff]  ;;  %s1076_s13 = sshll.u32 %s1438_s0, 4  ;;  %s1077_s13 = int_to_ptr.vmem [resolvable:$true] %s1076_s13 }
   0x8   :  { %v1464_v5 = vld [vmem:[#allocation2 + $0x50] sm:$0xff]  ;;  %v41_v9 = vunpack.c.0.s8 %v1457_v1  ;;  %v42_v11 = vunpack.c.1.s8 %v1457_v1  ;;  %v43_v12 = vunpack.c.2.s8 %v1457_v1  ;;  %v44_v13 = vunpack.c.3.s8 %v1457_v1  ;;  %v1482_v20 = vld [vmem:[#allocation2 + $0x98] sm:$0xff]  ;;  %v1488_v25 = vld [vmem:[#allocation2 + $0xa0] sm:$0xff] }
   0x9   :  { %v45_v14 = vunpack.c.0.s8 %v1459_v2  ;;  %v1476_v15 = vld [vmem:[#allocation2 + $0x90] sm:$0xff]  ;;  %v46_v16 = vunpack.c.1.s8 %v1459_v2  ;;  %v47_v17 = vunpack.c.2.s8 %v1459_v2  ;;  %v48_v18 = vunpack.c.3.s8 %v1459_v2  ;;  %v1494_v30 = vld [vmem:[#allocation2 + $0xd8] sm:$0xff]  ;;  %v1500_v35 = vld [vmem:[#allocation2 + $0xe0] sm:$0xff] }
   0xa   :  { %v49_v19 = vunpack.c.0.s8 %v1461_v3  ;;  %v50_v21 = vunpack.c.1.s8 %v1461_v3  ;;  %v51_v22 = vunpack.c.2.s8 %v1461_v3  ;;  %v52_v23 = vunpack.c.3.s8 %v1461_v3  ;;  %v1506_v40 = vld [vmem:[#allocation2 + $0xe8] sm:$0xff] }
   0xb   :  { %v53_v24 = vunpack.c.0.s8 %v1464_v5  ;;  %v54_v26 = vunpack.c.1.s8 %v1464_v5  ;;  %v55_v27 = vunpack.c.2.s8 %v1464_v5  ;;  %v56_v28 = vunpack.c.3.s8 %v1464_v5 }
   0xc   :  { %v57_v29 = vunpack.c.0.s8 %v1470_v10  ;;  %v58_v31 = vunpack.c.1.s8 %v1470_v10  ;;  %v59_v32 = vunpack.c.2.s8 %v1470_v10  ;;  %v60_v33 = vunpack.c.3.s8 %v1470_v10 }
   0xd   :  { %v61_v34 = vunpack.c.0.s8 %v1476_v15  ;;  %v62_v36 = vunpack.c.1.s8 %v1476_v15  ;;  %v63_v37 = vunpack.c.2.s8 %v1476_v15  ;;  %v64_v38 = vunpack.c.3.s8 %v1476_v15 }
   0xe   :  { %v65_v39 = vunpack.c.0.s8 %v1482_v20  ;;  %v66_v41 = vunpack.c.1.s8 %v1482_v20  ;;  %v67_v42 = vunpack.c.2.s8 %v1482_v20  ;;  %v68_v43 = vunpack.c.3.s8 %v1482_v20 }
   0xf   :  { %v69_v44 = vunpack.c.0.s8 %v1488_v25  ;;  %v70_v45 = vunpack.c.1.s8 %v1488_v25  ;;  %v71_v46 = vunpack.c.2.s8 %v1488_v25  ;;  %v72_v47 = vunpack.c.3.s8 %v1488_v25 }
  0x10   :  { %v73_v48 = vunpack.c.0.s8 %v1494_v30  ;;  %v74_v49 = vunpack.c.1.s8 %v1494_v30  ;;  %v75_v50 = vunpack.c.2.s8 %v1494_v30  ;;  %v76_v51 = vunpack.c.3.s8 %v1494_v30 }
  0x11   :  { %v77_v52 = vunpack.c.0.s8 %v1500_v35  ;;  %v78_v53 = vunpack.c.1.s8 %v1500_v35  ;;  %v79_v54 = vunpack.c.2.s8 %v1500_v35  ;;  %v80_v55 = vunpack.c.3.s8 %v1500_v35 }
  0x12   :  { %v81_v56 = vunpack.c.0.s8 %v1506_v40  ;;  %v82_v57 = vunpack.c.1.s8 %v1506_v40  ;;  %v83_v58 = vunpack.c.2.s8 %v1506_v40  ;;  %v84_v59 = vunpack.c.3.s8 %v1506_v40 }
  0x13   :  { %v1527_v60 = vand.u32 255, %v37_v4  ;;  %v1529_v61 = vand.u32 255, %v38_v6  ;;  %v1531_v62 = vand.u32 255, %v39_v7  ;;  %v1533_v63 = vand.u32 255, %v40_v8 }
  0x14   :  { %v1535_v0 = vand.u32 255, %v41_v9  ;;  %v1537_v1 = vand.u32 255, %v42_v11  ;;  %v1539_v2 = vand.u32 255, %v43_v12  ;;  %v1541_v3 = vand.u32 255, %v44_v13 }
  0x15   :  { %v1543_v5 = vand.u32 255, %v45_v14  ;;  %v1545_v10 = vand.u32 255, %v46_v16  ;;  %v1547_v4 = vand.u32 255, %v47_v17  ;;  %v1549_v6 = vand.u32 255, %v48_v18 }
  0x16   :  { %3340 = vst [vmem:[#allocation8_spill] sm:$0xff] %v1537_v1  ;;  %v1551_v7 = vand.u32 255, %v49_v19  ;;  %v1553_v8 = vand.u32 255, %v50_v21  ;;  %v1555_v9 = vand.u32 255, %v51_v22  ;;  %v1557_v11 = vand.u32 255, %v52_v23 }
  0x17   :  { %3341 = vst [vmem:[#allocation9_spill] sm:$0xff] %v1539_v2  ;;  %v1559_v12 = vand.u32 255, %v53_v24  ;;  %v1561_v13 = vand.u32 255, %v54_v26  ;;  %v1563_v14 = vand.u32 255, %v55_v27  ;;  %v1565_v15 = vand.u32 255, %v56_v28 }
  0x18   :  { %3342 = vst [vmem:[#allocation10_spill] sm:$0xff] %v1541_v3  ;;  %v1567_v16 = vand.u32 255, %v57_v29  ;;  %v1569_v17 = vand.u32 255, %v58_v31  ;;  %v1571_v18 = vand.u32 255, %v59_v32  ;;  %v1573_v19 = vand.u32 255, %v60_v33 }
  0x19   :  { %3343 = vst [vmem:[#allocation11_spill] sm:$0xff] %v1543_v5  ;;  %v1575_v20 = vand.u32 255, %v61_v34  ;;  %v1577_v21 = vand.u32 255, %v62_v36  ;;  %v1579_v22 = vand.u32 255, %v63_v37  ;;  %v1581_v23 = vand.u32 255, %v64_v38 }
  0x1a   :  { %3344 = vst [vmem:[#allocation12_spill] sm:$0xff] %v1545_v10  ;;  %v1583_v24 = vand.u32 255, %v65_v39  ;;  %v1585_v25 = vand.u32 255, %v66_v41  ;;  %v1587_v26 = vand.u32 255, %v67_v42  ;;  %v1589_v27 = vand.u32 255, %v68_v43 }
  0x1b   :  { %3345 = vst [vmem:[#allocation13_spill] sm:$0xff] %v1547_v4  ;;  %v1591_v28 = vand.u32 255, %v69_v44  ;;  %v1593_v29 = vand.u32 255, %v70_v45  ;;  %v1595_v30 = vand.u32 255, %v71_v46  ;;  %v1597_v31 = vand.u32 255, %v72_v47  ;;  %v1680_v47 = vld [vmem:[#allocation2 + $0x68] sm:$0xff] }
  0x1c   :  { %3346 = vst [vmem:[#allocation14_spill] sm:$0xff] %v1549_v6  ;;  %v1599_v32 = vand.u32 255, %v73_v48  ;;  %v1601_v33 = vand.u32 255, %v74_v49  ;;  %v1603_v34 = vand.u32 255, %v75_v50  ;;  %v1605_v35 = vand.u32 255, %v76_v51  ;;  %v1660_v49 = vld [vmem:[#allocation2 + $0x18] sm:$0xff] }
  0x1d   :  { %3347 = vst [vmem:[#allocation15_spill] sm:$0xff] %v1551_v7  ;;  %v1607_v36 = vand.u32 255, %v77_v52  ;;  %v1609_v37 = vand.u32 255, %v78_v53  ;;  %v1611_v38 = vand.u32 255, %v79_v54  ;;  %v1613_v39 = vand.u32 255, %v80_v55  ;;  %v1666_v51 = vld [vmem:[#allocation2 + $0x20] sm:$0xff] }
  0x1e   :  { %3348 = vst [vmem:[#allocation16_spill] sm:$0xff] %v1553_v8  ;;  %v1615_v40 = vand.u32 255, %v81_v56  ;;  %v1617_v41 = vand.u32 255, %v82_v57  ;;  %v1619_v42 = vand.u32 255, %v83_v58  ;;  %v1621_v43 = vand.u32 255, %v84_v59  ;;  %v1672_v56 = vld [vmem:[#allocation2 + $0x28] sm:$0xff] }
  0x1f   :  { %3349 = vst [vmem:[#allocation17_spill] sm:$0xff] %v1555_v9  ;;  %v1677_v48 = vld [vmem:[#allocation2 + $0x60] sm:$0xff]  ;;  %v194_v55 = vunpack.c.0.s8 %v1660_v49  ;;  %v195_v58 = vunpack.c.1.s8 %v1660_v49  ;;  %v196_v59 = vunpack.c.2.s8 %v1660_v49  ;;  %v197_v50 = vunpack.c.3.s8 %v1660_v49  ;;  %v1686_v46 = vld [vmem:[#allocation2 + $0x70] sm:$0xff]  ;;  %v1692_v44 = vld [vmem:[#allocation2 + $0xa8] sm:$0xff] }
  0x20   :  { %3350 = vst [vmem:[#allocation18_spill] sm:$0xff] %v1557_v11  ;;  %v198_v57 = vunpack.c.0.s8 %v1666_v51  ;;  %v199_v53 = vunpack.c.1.s8 %v1666_v51  ;;  %v200_v54 = vunpack.c.2.s8 %v1666_v51  ;;  %v201_v52 = vunpack.c.3.s8 %v1666_v51 }
  0x21   :  { %3351 = vst [vmem:[#allocation19_spill] sm:$0xff] %v1559_v12  ;;  %v202_v45 = vunpack.c.0.s8 %v1672_v56  ;;  %v205_v49 = vunpack.c.3.s8 %v1672_v56  ;;  %v209_v51 = vunpack.c.3.s8 %v1677_v48  ;;  %v1743_v7 = vand.u32 255, %v194_v55 }
  0x22   :  { %3352 = vst [vmem:[#allocation20_spill] sm:$0xff] %v1561_v13  ;;  %v1745_v6 = vand.u32 255, %v195_v58  ;;  %v1749_v4 = vand.u32 255, %v197_v50  ;;  %v1751_v10 = vand.u32 255, %v198_v57  ;;  %v1753_v5 = vand.u32 255, %v199_v53 }
  0x23   :  { %3353 = vst [vmem:[#allocation21_spill] sm:$0xff] %v1563_v14  ;;  %v1757_v3 = vand.u32 255, %v201_v52  ;;  %v1759_v2 = vand.u32 255, %v202_v45  ;;  %v1765_v55 = vand.u32 255, %v205_v49  ;;  %v1773_v53 = vand.u32 255, %v209_v51 }
  0x24   :  { %3354 = vst [vmem:[#allocation22_spill] sm:$0xff] %v1565_v15 }
  0x25   :  { %3355 = vst [vmem:[#allocation23_spill] sm:$0xff] %v1567_v16 }
  0x26   :  { %3356 = vst [vmem:[#allocation24_spill] sm:$0xff] %v1569_v17 }
  0x27   :  { %3357 = vst [vmem:[#allocation25_spill] sm:$0xff] %v1571_v18 }
  0x28   :  { %3358 = vst [vmem:[#allocation26_spill] sm:$0xff] %v1573_v19 }
  0x29   :  { %3359 = vst [vmem:[#allocation27_spill] sm:$0xff] %v1575_v20 }
  0x2a   :  { %3360 = vst [vmem:[#allocation28_spill] sm:$0xff] %v1577_v21 }
  0x2b   :  { %3361 = vst [vmem:[#allocation29_spill] sm:$0xff] %v1579_v22 }
  0x2c   :  { %3362 = vst [vmem:[#allocation30_spill] sm:$0xff] %v1581_v23 }
  0x2d   :  { %3363 = vst [vmem:[#allocation31_spill] sm:$0xff] %v1583_v24  ;;  %v1722_v24 = vld [vmem:[#allocation2 + $0x100] sm:$0xff] }
  0x2e   :  { %3364 = vst [vmem:[#allocation32_spill] sm:$0xff] %v1585_v25  ;;  %v238_v11 = vunpack.c.0.s8 %v1722_v24  ;;  %v240_v9 = vunpack.c.2.s8 %v1722_v24  ;;  %v241_v8 = vunpack.c.3.s8 %v1722_v24 }
  0x2f   :  { %3365 = vst [vmem:[#allocation33_spill] sm:$0xff] %v1587_v26  ;;  %v220_v26 = vunpack.c.2.s8 %v1692_v44 }
  0x30   :  { %3366 = vst [vmem:[#allocation34_spill] sm:$0xff] %v1589_v27  ;;  %v219_v27 = vunpack.c.1.s8 %v1692_v44 }
  0x31   :  { %3367 = vst [vmem:[#allocation35_spill] sm:$0xff] %v1591_v28  ;;  %v1716_v28 = vld [vmem:[#allocation2 + $0xf8] sm:$0xff] }
  0x32   :  { %3368 = vst [vmem:[#allocation36_spill] sm:$0xff] %v1593_v29  ;;  %v218_v29 = vunpack.c.0.s8 %v1692_v44  ;;  %v234_v14 = vunpack.c.0.s8 %v1716_v28  ;;  %v236_v13 = vunpack.c.2.s8 %v1716_v28  ;;  %v237_v12 = vunpack.c.3.s8 %v1716_v28 }
  0x33   :  { %3369 = vst [vmem:[#allocation37_spill] sm:$0xff] %v1595_v30  ;;  %v216_v30 = vunpack.c.2.s8 %v1686_v46  ;;  %v1793_v49 = vand.u32 255, %v219_v27 }
  0x34   :  { %3370 = vst [vmem:[#allocation38_spill] sm:$0xff] %v1597_v31  ;;  %v215_v31 = vunpack.c.1.s8 %v1686_v46 }
  0x35   :  { %3371 = vst [vmem:[#allocation39_spill] sm:$0xff] %v1599_v32  ;;  %v1710_v32 = vld [vmem:[#allocation2 + $0xf0] sm:$0xff] }
  0x36   :  { %3372 = vst [vmem:[#allocation40_spill] sm:$0xff] %v1601_v33  ;;  %v214_v33 = vunpack.c.0.s8 %v1686_v46  ;;  %v231_v17 = vunpack.c.1.s8 %v1710_v32  ;;  %v232_v16 = vunpack.c.2.s8 %v1710_v32  ;;  %v233_v15 = vunpack.c.3.s8 %v1710_v32 }
  0x37   :  { %3373 = vst [vmem:[#allocation41_spill] sm:$0xff] %v1603_v34  ;;  %v212_v34 = vunpack.c.2.s8 %v1680_v47 }
  0x38   :  { %3374 = vst [vmem:[#allocation42_spill] sm:$0xff] %v1605_v35  ;;  %v211_v35 = vunpack.c.1.s8 %v1680_v47 }
  0x39   :  { %3375 = vst [vmem:[#allocation43_spill] sm:$0xff] %v1607_v36  ;;  %v1704_v36 = vld [vmem:[#allocation2 + $0xb8] sm:$0xff]  ;;  %v1779_v45 = vand.u32 255, %v212_v34 }
  0x3a   :  { %3376 = vst [vmem:[#allocation44_spill] sm:$0xff] %v1609_v37  ;;  %v210_v37 = vunpack.c.0.s8 %v1680_v47  ;;  %v226_v21 = vunpack.c.0.s8 %v1704_v36  ;;  %v227_v20 = vunpack.c.1.s8 %v1704_v36  ;;  %v228_v19 = vunpack.c.2.s8 %v1704_v36 }
  0x3b   :  { %3377 = vst [vmem:[#allocation45_spill] sm:$0xff] %v1611_v38  ;;  %v208_v38 = vunpack.c.2.s8 %v1677_v48  ;;  %v229_v18 = vunpack.c.3.s8 %v1704_v36  ;;  %v239_v36 = vunpack.c.1.s8 %v1722_v24  ;;  %v1777_v52 = vand.u32 255, %v211_v35 }
  0x3c   :  { %3378 = vst [vmem:[#allocation46_spill] sm:$0xff] %v1613_v39  ;;  %v207_v39 = vunpack.c.1.s8 %v1677_v48 }
  0x3d   :  { %3379 = vst [vmem:[#allocation47_spill] sm:$0xff] %v1615_v40  ;;  %v1698_v40 = vld [vmem:[#allocation2 + $0xb0] sm:$0xff]  ;;  %v1771_v57 = vand.u32 255, %v208_v38  ;;  %v1791_v38 = vand.u32 255, %v218_v29  ;;  %v1811_v29 = vand.u32 255, %v228_v19  ;;  %v1813_v27 = vand.u32 255, %v229_v18 }
  0x3e   :  { %3380 = vst [vmem:[#allocation48_spill] sm:$0xff] %v1617_v41  ;;  %v206_v41 = vunpack.c.0.s8 %v1677_v48  ;;  %v217_v48 = vunpack.c.3.s8 %v1686_v46  ;;  %v222_v25 = vunpack.c.0.s8 %v1698_v40  ;;  %v223_v23 = vunpack.c.1.s8 %v1698_v40 }
  0x3f   :  { %3381 = vst [vmem:[#allocation49_spill] sm:$0xff] %v1619_v42  ;;  %v204_v42 = vunpack.c.2.s8 %v1672_v56  ;;  %v224_v22 = vunpack.c.2.s8 %v1698_v40  ;;  %v225_v46 = vunpack.c.3.s8 %v1698_v40  ;;  %v235_v40 = vunpack.c.1.s8 %v1716_v28 }
  0x40   :  { %3382 = vst [vmem:[#allocation50_spill] sm:$0xff] %v1621_v43  ;;  %v203_v43 = vunpack.c.1.s8 %v1672_v56  ;;  %v213_v56 = vunpack.c.3.s8 %v1680_v47  ;;  %v221_v47 = vunpack.c.3.s8 %v1692_v44  ;;  %v230_v44 = vunpack.c.0.s8 %v1710_v32 }
  0x41   :  { %3383 = vst [vmem:[#allocation51_spill] sm:$0xff] %v1743_v7  ;;  %v1747_v32 = vand.u32 255, %v196_v59  ;;  %v1755_v28 = vand.u32 255, %v200_v54  ;;  %v1763_v24 = vand.u32 255, %v204_v42  ;;  %v1767_v58 = vand.u32 255, %v206_v41 }
  0x42   :  { %3384 = vst [vmem:[#allocation52_spill] sm:$0xff] %v1745_v6  ;;  %v1761_v1 = vand.u32 255, %v203_v43  ;;  %v1769_v50 = vand.u32 255, %v207_v39  ;;  %v1775_v54 = vand.u32 255, %v210_v37  ;;  %v1781_v43 = vand.u32 255, %v213_v56 }
  0x43   :  { %3385 = vst [vmem:[#allocation53_spill] sm:$0xff] %v1747_v32  ;;  %v1783_v42 = vand.u32 255, %v214_v33  ;;  %v1785_v59 = vand.u32 255, %v215_v31  ;;  %v1787_v41 = vand.u32 255, %v216_v30  ;;  %v1789_v39 = vand.u32 255, %v217_v48 }
  0x44   :  { %3386 = vst [vmem:[#allocation54_spill] sm:$0xff] %v1749_v4  ;;  %v1795_v37 = vand.u32 255, %v220_v26  ;;  %v1797_v35 = vand.u32 255, %v221_v47  ;;  %v1799_v34 = vand.u32 255, %v222_v25  ;;  %v1801_v51 = vand.u32 255, %v223_v23 }
  0x45   :  { %3387 = vst [vmem:[#allocation55_spill] sm:$0xff] %v1751_v10  ;;  %v1803_v33 = vand.u32 255, %v224_v22  ;;  %v1805_v31 = vand.u32 255, %v225_v46  ;;  %v1807_v30 = vand.u32 255, %v226_v21  ;;  %v1809_v56 = vand.u32 255, %v227_v20 }
  0x46   :  { %3388 = vst [vmem:[#allocation56_spill] sm:$0xff] %v1753_v5  ;;  %v1815_v26 = vand.u32 255, %v230_v44  ;;  %v1817_v48 = vand.u32 255, %v231_v17  ;;  %v1819_v25 = vand.u32 255, %v232_v16  ;;  %v1821_v23 = vand.u32 255, %v233_v15  ;;  %v1876_v16 = vld [vmem:[#allocation2 + $0x30] sm:$0xff] }
  0x47   :  { %3389 = vst [vmem:[#allocation57_spill] sm:$0xff] %v1755_v28  ;;  %v1823_v22 = vand.u32 255, %v234_v14  ;;  %v1825_v47 = vand.u32 255, %v235_v40  ;;  %v1827_v21 = vand.u32 255, %v236_v13  ;;  %v1829_v20 = vand.u32 255, %v237_v12  ;;  %v1882_v40 = vld [vmem:[#allocation2 + $0x38] sm:$0xff] }
  0x48   :  { %3390 = vst [vmem:[#allocation58_spill] sm:$0xff] %v1757_v3  ;;  %v1831_v19 = vand.u32 255, %v238_v11  ;;  %v1833_v18 = vand.u32 255, %v239_v36  ;;  %v1835_v46 = vand.u32 255, %v240_v9  ;;  %v1837_v17 = vand.u32 255, %v241_v8  ;;  %v1888_v14 = vld [vmem:[#allocation2 + $0x40] sm:$0xff] }
  0x49   :  { %3391 = vst [vmem:[#allocation59_spill] sm:$0xff] %v1759_v2  ;;  %v351_v15 = vunpack.c.0.s8 %v1876_v16  ;;  %v352_v13 = vunpack.c.1.s8 %v1876_v16  ;;  %v353_v12 = vunpack.c.2.s8 %v1876_v16  ;;  %v354_v11 = vunpack.c.3.s8 %v1876_v16 }
  0x4a   :  { %3392 = vst [vmem:[#allocation60_spill] sm:$0xff] %v1761_v1  ;;  %v355_v44 = vunpack.c.0.s8 %v1882_v40  ;;  %v356_v8 = vunpack.c.1.s8 %v1882_v40  ;;  %v357_v36 = vunpack.c.2.s8 %v1882_v40  ;;  %v358_v9 = vunpack.c.3.s8 %v1882_v40 }
  0x4b   :  { %3393 = vst [vmem:[#allocation61_spill] sm:$0xff] %v1763_v24  ;;  %v362_v16 = vunpack.c.3.s8 %v1888_v14  ;;  %v1959_v3 = vand.u32 255, %v351_v15  ;;  %v1961_v28 = vand.u32 255, %v352_v13  ;;  %v1965_v5 = vand.u32 255, %v354_v11 }
  0x4c   :  { %3394 = vst [vmem:[#allocation62_spill] sm:$0xff] %v1765_v55  ;;  %v1967_v10 = vand.u32 255, %v355_v44  ;;  %v1969_v4 = vand.u32 255, %v356_v8  ;;  %v1973_v32 = vand.u32 255, %v358_v9 }
  0x4d   :  { %3395 = vst [vmem:[#allocation63_spill] sm:$0xff] %v1767_v58  ;;  %v1981_v15 = vand.u32 255, %v362_v16 }
  0x4e   :  { %3396 = vst [vmem:[#allocation64_spill] sm:$0xff] %v1769_v50 }
  0x4f   :  { %3397 = vst [vmem:[#allocation65_spill] sm:$0xff] %v1771_v57 }
  0x50   :  { %3398 = vst [vmem:[#allocation66_spill] sm:$0xff] %v1773_v53 }
  0x51   :  { %3399 = vst [vmem:[#allocation67_spill] sm:$0xff] %v1775_v54 }
  0x52   :  { %3400 = vst [vmem:[#allocation68_spill] sm:$0xff] %v1777_v52 }
  0x53   :  { %3401 = vst [vmem:[#allocation69_spill] sm:$0xff] %v1779_v45 }
  0x54   :  { %3402 = vst [vmem:[#allocation70_spill] sm:$0xff] %v1781_v43 }
  0x55   :  { %3403 = vst [vmem:[#allocation71_spill] sm:$0xff] %v1783_v42 }
  0x56   :  { %3404 = vst [vmem:[#allocation72_spill] sm:$0xff] %v1785_v59 }
  0x57   :  { %3405 = vst [vmem:[#allocation73_spill] sm:$0xff] %v1787_v41 }
  0x58   :  { %3406 = vst [vmem:[#allocation74_spill] sm:$0xff] %v1789_v39  ;;  %v1938_v39 = vld [vmem:[#allocation2 + $0x118] sm:$0xff] }
  0x59   :  { %3407 = vst [vmem:[#allocation75_spill] sm:$0xff] %v1791_v38  ;;  %v395_v24 = vunpack.c.0.s8 %v1938_v39  ;;  %v397_v1 = vunpack.c.2.s8 %v1938_v39  ;;  %v398_v2 = vunpack.c.3.s8 %v1938_v39 }
  0x5a   :  { %3408 = vst [vmem:[#allocation76_spill] sm:$0xff] %v1793_v49 }
  0x5b   :  { %3409 = vst [vmem:[#allocation77_spill] sm:$0xff] %v1795_v37 }
  0x5c   :  { %3410 = vst [vmem:[#allocation78_spill] sm:$0xff] %v1797_v35  ;;  %v1932_v35 = vld [vmem:[#allocation2 + $0x110] sm:$0xff] }
  0x5d   :  { %3411 = vst [vmem:[#allocation79_spill] sm:$0xff] %v1799_v34  ;;  %v391_v50 = vunpack.c.0.s8 %v1932_v35  ;;  %v393_v58 = vunpack.c.2.s8 %v1932_v35  ;;  %v394_v55 = vunpack.c.3.s8 %v1932_v35 }
  0x5e   :  { %3412 = vst [vmem:[#allocation80_spill] sm:$0xff] %v1801_v51 }
  0x5f   :  { %3413 = vst [vmem:[#allocation81_spill] sm:$0xff] %v1803_v33 }
  0x60   :  { %3414 = vst [vmem:[#allocation82_spill] sm:$0xff] %v1805_v31  ;;  %v1926_v31 = vld [vmem:[#allocation2 + $0x108] sm:$0xff] }
  0x61   :  { %3415 = vst [vmem:[#allocation83_spill] sm:$0xff] %v1807_v30  ;;  %v388_v54 = vunpack.c.1.s8 %v1926_v31  ;;  %v389_v53 = vunpack.c.2.s8 %v1926_v31  ;;  %v390_v57 = vunpack.c.3.s8 %v1926_v31 }
  0x62   :  { %3416 = vst [vmem:[#allocation84_spill] sm:$0xff] %v1809_v56 }
  0x63   :  { %3417 = vst [vmem:[#allocation85_spill] sm:$0xff] %v1811_v29 }
  0x64   :  { %3418 = vst [vmem:[#allocation86_spill] sm:$0xff] %v1813_v27  ;;  %v1920_v27 = vld [vmem:[#allocation2 + $0xd0] sm:$0xff] }
  0x65   :  { %3419 = vst [vmem:[#allocation87_spill] sm:$0xff] %v1815_v26  ;;  %v383_v42 = vunpack.c.0.s8 %v1920_v27  ;;  %v384_v43 = vunpack.c.1.s8 %v1920_v27  ;;  %v385_v45 = vunpack.c.2.s8 %v1920_v27  ;;  %v386_v52 = vunpack.c.3.s8 %v1920_v27 }
  0x66   :  { %3420 = vst [vmem:[#allocation88_spill] sm:$0xff] %v1817_v48  ;;  %v396_v27 = vunpack.c.1.s8 %v1938_v39 }
  0x67   :  { %3421 = vst [vmem:[#allocation89_spill] sm:$0xff] %v1819_v25 }
  0x68   :  { %3422 = vst [vmem:[#allocation90_spill] sm:$0xff] %v1821_v23  ;;  %v1893_v23 = vld [vmem:[#allocation2 + $0x78] sm:$0xff] }
  0x69   :  { %3423 = vst [vmem:[#allocation91_spill] sm:$0xff] %v1823_v22  ;;  %v1896_v22 = vld [vmem:[#allocation2 + $0x80] sm:$0xff]  ;;  %v364_v25 = vunpack.c.1.s8 %v1893_v23  ;;  %v365_v48 = vunpack.c.2.s8 %v1893_v23  ;;  %v366_v40 = vunpack.c.3.s8 %v1893_v23 }
  0x6a   :  { %3424 = vst [vmem:[#allocation92_spill] sm:$0xff] %v1825_v47  ;;  %v1914_v47 = vld [vmem:[#allocation2 + $0xc8] sm:$0xff]  ;;  %v367_v26 = vunpack.c.0.s8 %v1896_v22  ;;  %v368_v29 = vunpack.c.1.s8 %v1896_v22  ;;  %v369_v56 = vunpack.c.2.s8 %v1896_v22 }
  0x6b   :  { %3425 = vst [vmem:[#allocation93_spill] sm:$0xff] %v1827_v21  ;;  %v363_v21 = vunpack.c.0.s8 %v1893_v23  ;;  %v379_v38 = vunpack.c.0.s8 %v1914_v47  ;;  %v380_v41 = vunpack.c.1.s8 %v1914_v47  ;;  %v381_v59 = vunpack.c.2.s8 %v1914_v47 }
  0x6c   :  { %3426 = vst [vmem:[#allocation94_spill] sm:$0xff] %v1829_v20  ;;  %v361_v20 = vunpack.c.2.s8 %v1888_v14  ;;  %v1987_v44 = vand.u32 255, %v365_v48  ;;  %v1989_v11 = vand.u32 255, %v366_v40  ;;  %v1991_v8 = vand.u32 255, %v367_v26 }
  0x6d   :  { %3427 = vst [vmem:[#allocation95_spill] sm:$0xff] %v1831_v19  ;;  %v1902_v19 = vld [vmem:[#allocation2 + $0x88] sm:$0xff]  ;;  %v1983_v13 = vand.u32 255, %v363_v21  ;;  %v1993_v9 = vand.u32 255, %v368_v29  ;;  %v2017_v40 = vand.u32 255, %v380_v41  ;;  %v2037_v41 = vand.u32 255, %v390_v57 }
  0x6e   :  { %3428 = vst [vmem:[#allocation96_spill] sm:$0xff] %v1833_v18  ;;  %v360_v18 = vunpack.c.1.s8 %v1888_v14  ;;  %v371_v30 = vunpack.c.0.s8 %v1902_v19  ;;  %v372_v33 = vunpack.c.1.s8 %v1902_v19  ;;  %v373_v51 = vunpack.c.2.s8 %v1902_v19 }
  0x6f   :  { %3429 = vst [vmem:[#allocation97_spill] sm:$0xff] %v1835_v46  ;;  %v1908_v46 = vld [vmem:[#allocation2 + $0xc0] sm:$0xff]  ;;  %v374_v23 = vunpack.c.3.s8 %v1902_v19  ;;  %v382_v19 = vunpack.c.3.s8 %v1914_v47  ;;  %v392_v47 = vunpack.c.1.s8 %v1932_v35  ;;  %v1971_v35 = vand.u32 255, %v357_v36 }
  0x70   :  { %3430 = vst [vmem:[#allocation98_spill] sm:$0xff] %v1837_v17  ;;  %v359_v17 = vunpack.c.0.s8 %v1888_v14  ;;  %v370_v14 = vunpack.c.3.s8 %v1896_v22  ;;  %v375_v34 = vunpack.c.0.s8 %v1908_v46  ;;  %v376_v37 = vunpack.c.1.s8 %v1908_v46 }
  0x71   :  { %v377_v49 = vunpack.c.2.s8 %v1908_v46  ;;  %v378_v22 = vunpack.c.3.s8 %v1908_v46  ;;  %v387_v46 = vunpack.c.0.s8 %v1926_v31  ;;  %3431 = vst [vmem:[#allocation99_spill] sm:$0xff] %v1959_v3  ;;  %v1963_v31 = vand.u32 255, %v353_v12 }
  0x72   :  { %3432 = vst [vmem:[#allocation100_spill] sm:$0xff] %v1961_v28  ;;  %v1975_v6 = vand.u32 255, %v359_v17  ;;  %v1977_v7 = vand.u32 255, %v360_v18  ;;  %v1979_v39 = vand.u32 255, %v361_v20  ;;  %v1985_v12 = vand.u32 255, %v364_v25 }
  0x73   :  { %3433 = vst [vmem:[#allocation101_spill] sm:$0xff] %v1963_v31  ;;  %v1995_v17 = vand.u32 255, %v369_v56  ;;  %v1997_v18 = vand.u32 255, %v370_v14  ;;  %v1999_v20 = vand.u32 255, %v371_v30  ;;  %v2001_v36 = vand.u32 255, %v372_v33  ;;  %v3587_v31 = vld [vmem:[#allocation49_spill] sm:$0xff] }
  0x74   :  { %3434 = vst [vmem:[#allocation102_spill] sm:$0xff] %v1965_v5  ;;  %v2003_v21 = vand.u32 255, %v373_v51  ;;  %v2005_v25 = vand.u32 255, %v374_v23  ;;  %v2007_v48 = vand.u32 255, %v375_v34  ;;  %v2009_v16 = vand.u32 255, %v376_v37 }
  0x75   :  { %3435 = vst [vmem:[#allocation103_spill] sm:$0xff] %v1967_v10  ;;  %v2011_v26 = vand.u32 255, %v377_v49  ;;  %v2013_v29 = vand.u32 255, %v378_v22  ;;  %v2015_v56 = vand.u32 255, %v379_v38  ;;  %v2019_v30 = vand.u32 255, %v381_v59  ;;  %v3578_v10 = vld [vmem:[#allocation46_spill] sm:$0xff] }
  0x76   :  { %3436 = vst [vmem:[#allocation104_spill] sm:$0xff] %v1969_v4  ;;  %v2021_v33 = vand.u32 255, %v382_v19  ;;  %v2023_v51 = vand.u32 255, %v383_v42  ;;  %v2025_v14 = vand.u32 255, %v384_v43  ;;  %v2027_v34 = vand.u32 255, %v385_v45 }
  0x77   :  { %3437 = vst [vmem:[#allocation105_spill] sm:$0xff] %v1971_v35  ;;  %v2029_v37 = vand.u32 255, %v386_v52  ;;  %v2031_v49 = vand.u32 255, %v387_v46  ;;  %v2033_v23 = vand.u32 255, %v388_v54  ;;  %v2035_v38 = vand.u32 255, %v389_v53  ;;  %v3569_v35 = vld [vmem:[#allocation43_spill] sm:$0xff] }
  0x78   :  { %3438 = vst [vmem:[#allocation106_spill] sm:$0xff] %v1973_v32  ;;  %v2039_v59 = vand.u32 255, %v391_v50  ;;  %v2041_v22 = vand.u32 255, %v392_v47  ;;  %v2043_v42 = vand.u32 255, %v393_v58  ;;  %v2045_v43 = vand.u32 255, %v394_v55 }
  0x79   :  { %3439 = vst [vmem:[#allocation107_spill] sm:$0xff] %v1975_v6  ;;  %v2047_v45 = vand.u32 255, %v395_v24  ;;  %v2049_v52 = vand.u32 255, %v396_v27  ;;  %v2051_v19 = vand.u32 255, %v397_v1  ;;  %v2053_v54 = vand.u32 255, %v398_v2  ;;  %v3560_v6 = vld [vmem:[#allocation40_spill] sm:$0xff] }
  0x7a   :  { %3440 = vst [vmem:[#allocation108_spill] sm:$0xff] %v1977_v7  ;;  %v3479_v27 = vcvt.s32.f32 %v1527_v60  ;;  %v3480_v50 = vcvt.s32.f32 %v1529_v61  ;;  %v3481_v58 = vcvt.s32.f32 %v1531_v62  ;;  %v3482_v47 = vcvt.s32.f32 %v1533_v63  ;;  %v3484_v60 = vld [vmem:[#allocation8_spill] sm:$0xff]  ;;  %v3490_v63 = vld [vmem:[#allocation11_spill] sm:$0xff] }
  0x7b   :  { %3441 = vst [vmem:[#allocation109_spill] sm:$0xff] %v1979_v39  ;;  %v3483_v2 = vcvt.s32.f32 %v1535_v0  ;;  %v3551_v39 = vld [vmem:[#allocation37_spill] sm:$0xff] }
  0x7c   :  { %3442 = vst [vmem:[#allocation110_spill] sm:$0xff] %v1981_v15  ;;  %v2087_v53 = vmul.f32 0.299, %v3479_v27  ;;  %v2091_v57 = vmul.f32 0.299, %v3480_v50  ;;  %v3485_v27 = vcvt.s32.f32 %v3484_v60  ;;  %v3486_v50 = vld [vmem:[#allocation9_spill] sm:$0xff] }
  0x7d   :  { %3443 = vst [vmem:[#allocation111_spill] sm:$0xff] %v1983_v13  ;;  %v2095_v46 = vmul.f32 0.299, %v3481_v58  ;;  %v2100_v55 = vmul.f32 0.299, %v3482_v47  ;;  %v3487_v62 = vcvt.s32.f32 %v3486_v50  ;;  %v3491_v47 = vcvt.s32.f32 %v3490_v63  ;;  %v3496_v50 = vld [vmem:[#allocation14_spill] sm:$0xff] }
  0x7e   :  { %3444 = vst [vmem:[#allocation112_spill] sm:$0xff] %v1985_v12  ;;  %v2104_v1 = vmul.f32 0.299, %v3483_v2  ;;  %v3492_v2 = vld [vmem:[#allocation12_spill] sm:$0xff]  ;;  %v3542_v13 = vld [vmem:[#allocation34_spill] sm:$0xff] }
  0x7f   :  { %3445 = vst [vmem:[#allocation113_spill] sm:$0xff] %v1987_v44  ;;  %v2113_v58 = vmul.f32 0.299, %v3487_v62  ;;  %v3493_v60 = vcvt.s32.f32 %v3492_v2  ;;  %v3497_v62 = vcvt.s32.f32 %v3496_v50  ;;  %v3502_v2 = vld [vmem:[#allocation17_spill] sm:$0xff]  ;;  %v3533_v44 = vld [vmem:[#allocation31_spill] sm:$0xff] }
  0x80   :  { %3446 = vst [vmem:[#allocation114_spill] sm:$0xff] %v1989_v11 }
  0x81   :  { %3447 = vst [vmem:[#allocation115_spill] sm:$0xff] %v1991_v8  ;;  %v3524_v8 = vld [vmem:[#allocation28_spill] sm:$0xff] }
  0x82   :  { %3448 = vst [vmem:[#allocation116_spill] sm:$0xff] %v1993_v9 }
  0x83   :  { %3449 = vst [vmem:[#allocation117_spill] sm:$0xff] %v1995_v17  ;;  %v3518_v17 = vld [vmem:[#allocation25_spill] sm:$0xff] }
  0x84   :  { %3450 = vst [vmem:[#allocation118_spill] sm:$0xff] %v1997_v18 }
  0x85   :  { %3451 = vst [vmem:[#allocation119_spill] sm:$0xff] %v1999_v20  ;;  %v3512_v20 = vld [vmem:[#allocation22_spill] sm:$0xff] }
  0x86   :  { %3452 = vst [vmem:[#allocation120_spill] sm:$0xff] %v2001_v36 }
  0x87   :  { %3453 = vst [vmem:[#allocation121_spill] sm:$0xff] %v2003_v21  ;;  %v3506_v21 = vld [vmem:[#allocation19_spill] sm:$0xff] }
  0x88   :  { %3454 = vst [vmem:[#allocation122_spill] sm:$0xff] %v2005_v25 }
  0x89   :  { %3455 = vst [vmem:[#allocation123_spill] sm:$0xff] %v2007_v48  ;;  %v3500_v48 = vld [vmem:[#allocation16_spill] sm:$0xff] }
  0x8a   :  { %3456 = vst [vmem:[#allocation124_spill] sm:$0xff] %v2009_v16  ;;  %v2134_v16 = vmul.f32 0.299, %v3497_v62  ;;  %v3501_v0 = vcvt.s32.f32 %v3500_v48  ;;  %v3519_v48 = vcvt.s32.f32 %v3518_v17  ;;  %v3543_v17 = vcvt.s32.f32 %v3542_v13 }
  0x8b   :  { %3457 = vst [vmem:[#allocation125_spill] sm:$0xff] %v2011_v26  ;;  %v3494_v26 = vld [vmem:[#allocation13_spill] sm:$0xff]  ;;  %v3570_v13 = vcvt.s32.f32 %v3569_v35 }
  0x8c   :  { %3458 = vst [vmem:[#allocation126_spill] sm:$0xff] %v2013_v29  ;;  %v2121_v29 = vmul.f32 0.299, %v3491_v47  ;;  %v3495_v61 = vcvt.s32.f32 %v3494_v26  ;;  %v3513_v26 = vcvt.s32.f32 %v3512_v20  ;;  %v3534_v20 = vcvt.s32.f32 %v3533_v44 }
  0x8d   :  { %3459 = vst [vmem:[#allocation127_spill] sm:$0xff] %v2015_v56  ;;  %v3488_v56 = vld [vmem:[#allocation10_spill] sm:$0xff]  ;;  %v3561_v44 = vcvt.s32.f32 %v3560_v6  ;;  %v3588_v6 = vcvt.s32.f32 %v3587_v31 }
  0x8e   :  { %3460 = vst [vmem:[#allocation128_spill] sm:$0xff] %v2017_v40  ;;  %v2108_v40 = vmul.f32 0.299, %v3485_v27  ;;  %v3489_v24 = vcvt.s32.f32 %v3488_v56  ;;  %v2126_v27 = vmul.f32 0.299, %v3493_v60  ;;  %v3503_v60 = vcvt.s32.f32 %v3502_v2  ;;  %v3599_v31 = vld [vmem:[#allocation54_spill] sm:$0xff] }
  0x8f   :  { %3461 = vst [vmem:[#allocation129_spill] sm:$0xff] %v2019_v30  ;;  %v3507_v56 = vcvt.s32.f32 %v3506_v21  ;;  %v3525_v21 = vcvt.s32.f32 %v3524_v8  ;;  %v3552_v8 = vcvt.s32.f32 %v3551_v39  ;;  %v3579_v39 = vcvt.s32.f32 %v3578_v10 }
  0x90   :  { %3462 = vst [vmem:[#allocation130_spill] sm:$0xff] %v2021_v33  ;;  %v2117_v30 = vmul.f32 0.299, %v3489_v24  ;;  %v2130_v33 = vmul.f32 0.299, %v3495_v61  ;;  %v3498_v24 = vld [vmem:[#allocation15_spill] sm:$0xff] }
  0x91   :  { %3463 = vst [vmem:[#allocation131_spill] sm:$0xff] %v2023_v51  ;;  %v3499_v63 = vcvt.s32.f32 %v3498_v24  ;;  %v2143_v51 = vmul.f32 0.299, %v3501_v0  ;;  %v2147_v25 = vmul.f32 0.299, %v3503_v60  ;;  %v3504_v61 = vld [vmem:[#allocation18_spill] sm:$0xff] }
  0x92   :  { %3464 = vst [vmem:[#allocation132_spill] sm:$0xff] %v2025_v14  ;;  %v3505_v50 = vcvt.s32.f32 %v3504_v61  ;;  %v2156_v14 = vmul.f32 0.299, %v3507_v56  ;;  %v3508_v24 = vld [vmem:[#allocation20_spill] sm:$0xff]  ;;  %v3510_v0 = vld [vmem:[#allocation21_spill] sm:$0xff]  ;;  %v3514_v61 = vld [vmem:[#allocation23_spill] sm:$0xff] }
  0x93   :  { %3465 = vst [vmem:[#allocation133_spill] sm:$0xff] %v2027_v34  ;;  %v2139_v47 = vmul.f32 0.299, %v3499_v63  ;;  %v3509_v63 = vcvt.s32.f32 %v3508_v24  ;;  %v3511_v2 = vcvt.s32.f32 %v3510_v0  ;;  %v2169_v34 = vmul.f32 0.299, %v3513_v26  ;;  %v3516_v56 = vld [vmem:[#allocation24_spill] sm:$0xff] }
  0x94   :  { %3466 = vst [vmem:[#allocation134_spill] sm:$0xff] %v2029_v37  ;;  %v2152_v62 = vmul.f32 0.299, %v3505_v50  ;;  %v3515_v50 = vcvt.s32.f32 %v3514_v61  ;;  %v3517_v24 = vcvt.s32.f32 %v3516_v56  ;;  %v2182_v37 = vmul.f32 0.299, %v3519_v48  ;;  %v3520_v0 = vld [vmem:[#allocation26_spill] sm:$0xff] }
  0x95   :  { %3467 = vst [vmem:[#allocation135_spill] sm:$0xff] %v2031_v49  ;;  %v2160_v36 = vmul.f32 0.299, %v3509_v63  ;;  %v2165_v60 = vmul.f32 0.299, %v3511_v2  ;;  %v3521_v2 = vcvt.s32.f32 %v3520_v0  ;;  %v3522_v26 = vld [vmem:[#allocation27_spill] sm:$0xff] }
  0x96   :  { %3468 = vst [vmem:[#allocation136_spill] sm:$0xff] %v2033_v23  ;;  %v2173_v18 = vmul.f32 0.299, %v3515_v50  ;;  %v2178_v63 = vmul.f32 0.299, %v3517_v24  ;;  %v3523_v61 = vcvt.s32.f32 %v3522_v26  ;;  %v3527_v56 = vld [vmem:[#allocation29_spill] sm:$0xff] }
  0x97   :  { %3469 = vst [vmem:[#allocation137_spill] sm:$0xff] %v2035_v38  ;;  %v2186_v9 = vmul.f32 0.299, %v3521_v2  ;;  %v2195_v49 = vmul.f32 0.299, %v3525_v21  ;;  %v3528_v24 = vcvt.s32.f32 %v3527_v56  ;;  %v3530_v48 = vld [vmem:[#allocation30_spill] sm:$0xff] }
  0x98   :  { %3470 = vst [vmem:[#allocation138_spill] sm:$0xff] %v2037_v41  ;;  %v2191_v50 = vmul.f32 0.299, %v3523_v61  ;;  %v3531_v0 = vcvt.s32.f32 %v3530_v48  ;;  %v2208_v23 = vmul.f32 0.299, %v3534_v20  ;;  %v3536_v26 = vld [vmem:[#allocation32_spill] sm:$0xff] }
  0x99   :  { %3471 = vst [vmem:[#allocation139_spill] sm:$0xff] %v2039_v59  ;;  %v2199_v11 = vmul.f32 0.299, %v3528_v24  ;;  %v3537_v61 = vcvt.s32.f32 %v3536_v26  ;;  %v3539_v21 = vld [vmem:[#allocation33_spill] sm:$0xff]  ;;  %v2221_v38 = vmul.f32 0.299, %v3543_v17 }
  0x9a   :  { %3472 = vst [vmem:[#allocation140_spill] sm:$0xff] %v2041_v22  ;;  %v2204_v2 = vmul.f32 0.299, %v3531_v0  ;;  %v3540_v56 = vcvt.s32.f32 %v3539_v21  ;;  %v3545_v48 = vld [vmem:[#allocation35_spill] sm:$0xff]  ;;  %v3548_v20 = vld [vmem:[#allocation36_spill] sm:$0xff]  ;;  %v3554_v21 = vld [vmem:[#allocation38_spill] sm:$0xff] }
  0x9b   :  { %3473 = vst [vmem:[#allocation141_spill] sm:$0xff] %v2043_v42  ;;  %v2212_v12 = vmul.f32 0.299, %v3537_v61  ;;  %v3546_v0 = vcvt.s32.f32 %v3545_v48  ;;  %v3549_v26 = vcvt.s32.f32 %v3548_v20  ;;  %v2234_v41 = vmul.f32 0.299, %v3552_v8  ;;  %v3557_v17 = vld [vmem:[#allocation39_spill] sm:$0xff] }
  0x9c   :  { %3474 = vst [vmem:[#allocation142_spill] sm:$0xff] %v2045_v43  ;;  %v2217_v24 = vmul.f32 0.299, %v3540_v56  ;;  %v3555_v56 = vcvt.s32.f32 %v3554_v21  ;;  %v3558_v48 = vcvt.s32.f32 %v3557_v17  ;;  %v2247_v59 = vmul.f32 0.299, %v3561_v44  ;;  %v3563_v20 = vld [vmem:[#allocation41_spill] sm:$0xff] }
  0x9d   :  { %3475 = vst [vmem:[#allocation143_spill] sm:$0xff] %v2047_v45  ;;  %v2225_v15 = vmul.f32 0.299, %v3546_v0  ;;  %v2230_v61 = vmul.f32 0.299, %v3549_v26  ;;  %v3564_v26 = vcvt.s32.f32 %v3563_v20  ;;  %v3566_v8 = vld [vmem:[#allocation42_spill] sm:$0xff] }
  0x9e   :  { %3476 = vst [vmem:[#allocation144_spill] sm:$0xff] %v2049_v52  ;;  %v2238_v7 = vmul.f32 0.299, %v3555_v56  ;;  %v2243_v0 = vmul.f32 0.299, %v3558_v48  ;;  %v3567_v21 = vcvt.s32.f32 %v3566_v8  ;;  %v3572_v17 = vld [vmem:[#allocation44_spill] sm:$0xff] }
  0x9f   :  { %3477 = vst [vmem:[#allocation145_spill] sm:$0xff] %v2051_v19  ;;  %v2251_v32 = vmul.f32 0.299, %v3564_v26  ;;  %v2260_v22 = vmul.f32 0.299, %v3570_v13  ;;  %v3573_v48 = vcvt.s32.f32 %v3572_v17  ;;  %v3575_v44 = vld [vmem:[#allocation45_spill] sm:$0xff] }
  0xa0   :  { %3478 = vst [vmem:[#allocation146_spill] sm:$0xff] %v2053_v54  ;;  %v2256_v56 = vmul.f32 0.299, %v3567_v21  ;;  %v3576_v20 = vcvt.s32.f32 %v3575_v44  ;;  %v2273_v42 = vmul.f32 0.299, %v3579_v39  ;;  %v3581_v8 = vld [vmem:[#allocation47_spill] sm:$0xff] }
  0xa1   :  { %3526 = vst [vmem:[#allocation8_spill] sm:$0xff] %v2195_v49  ;;  %v2264_v4 = vmul.f32 0.299, %v3573_v48  ;;  %v3582_v21 = vcvt.s32.f32 %v3581_v8  ;;  %v3584_v13 = vld [vmem:[#allocation48_spill] sm:$0xff]  ;;  %v2286_v43 = vmul.f32 0.299, %v3588_v6  ;;  %v3600_v6 = vcvt.s32.f32 %v3599_v31 }
  0xa2   :  { %3529 = vst [vmem:[#allocation9_spill] sm:$0xff] %v2199_v11  ;;  %v2269_v26 = vmul.f32 0.299, %v3576_v20  ;;  %v3585_v17 = vcvt.s32.f32 %v3584_v13  ;;  %v3590_v44 = vld [vmem:[#allocation51_spill] sm:$0xff]  ;;  %v3592_v39 = vld [vmem:[#allocation50_spill] sm:$0xff]  ;;  %v3597_v45 = vld [vmem:[#allocation53_spill] sm:$0xff] }
  0xa3   :  { %3532 = vst [vmem:[#allocation10_spill] sm:$0xff] %v2204_v2  ;;  %v2277_v5 = vmul.f32 0.299, %v3582_v21  ;;  %v3591_v20 = vcvt.s32.f32 %v3590_v44  ;;  %v3595_v21 = vld [vmem:[#allocation52_spill] sm:$0xff]  ;;  %v3598_v13 = vcvt.s32.f32 %v3597_v45 }
  0xa4   :  { %3535 = vst [vmem:[#allocation11_spill] sm:$0xff] %v2208_v23  ;;  %v2282_v48 = vmul.f32 0.299, %v3585_v17  ;;  %v3611_v19 = vld [vmem:[#allocation60_spill] sm:$0xff] }
  0xa5   :  { %3538 = vst [vmem:[#allocation12_spill] sm:$0xff] %v2212_v12  ;;  %v543_v28 = vmul.f32 0.587, %v3591_v20  ;;  %v545_v17 = vmul.f32 0.587, %v3598_v13  ;;  %v3609_v13 = vld [vmem:[#allocation59_spill] sm:$0xff]  ;;  %v3612_v31 = vcvt.s32.f32 %v3611_v19 }
  0xa6   :  { %3541 = vst [vmem:[#allocation13_spill] sm:$0xff] %v2217_v24  ;;  %v3610_v3 = vcvt.s32.f32 %v3609_v13  ;;  %v3622_v13 = vld [vmem:[#allocation65_spill] sm:$0xff] }
  0xa7   :  { %3544 = vst [vmem:[#allocation14_spill] sm:$0xff] %v2221_v38 }
  0xa8   :  { %3547 = vst [vmem:[#allocation15_spill] sm:$0xff] %v2225_v15 }
  0xa9   :  { %3550 = vst [vmem:[#allocation16_spill] sm:$0xff] %v2230_v61 }
  0xaa   :  { %3553 = vst [vmem:[#allocation17_spill] sm:$0xff] %v2234_v41 }
  0xab   :  { %3556 = vst [vmem:[#allocation18_spill] sm:$0xff] %v2238_v7 }
  0xac   :  { %3559 = vst [vmem:[#allocation19_spill] sm:$0xff] %v2243_v0 }
  0xad   :  { %3562 = vst [vmem:[#allocation20_spill] sm:$0xff] %v2247_v59 }
  0xae   :  { %3565 = vst [vmem:[#allocation21_spill] sm:$0xff] %v2251_v32  ;;  %v3615_v32 = vld [vmem:[#allocation62_spill] sm:$0xff] }
  0xaf   :  { %3568 = vst [vmem:[#allocation22_spill] sm:$0xff] %v2256_v56  ;;  %v3613_v56 = vld [vmem:[#allocation61_spill] sm:$0xff] }
  0xb0   :  { %3571 = vst [vmem:[#allocation23_spill] sm:$0xff] %v2260_v22 }
  0xb1   :  { %3574 = vst [vmem:[#allocation24_spill] sm:$0xff] %v2264_v4  ;;  %v3603_v4 = vld [vmem:[#allocation56_spill] sm:$0xff] }
  0xb2   :  { %3577 = vst [vmem:[#allocation25_spill] sm:$0xff] %v2269_v26  ;;  %v3601_v26 = vld [vmem:[#allocation55_spill] sm:$0xff]  ;;  %v3604_v10 = vcvt.s32.f32 %v3603_v4  ;;  %v3616_v4 = vcvt.s32.f32 %v3615_v32 }
  0xb3   :  { %3580 = vst [vmem:[#allocation26_spill] sm:$0xff] %v2273_v42  ;;  %v3593_v42 = vcvt.s32.f32 %v3592_v39  ;;  %v3602_v44 = vcvt.s32.f32 %v3601_v26  ;;  %v3605_v39 = vld [vmem:[#allocation57_spill] sm:$0xff]  ;;  %v3614_v26 = vcvt.s32.f32 %v3613_v56  ;;  %v3625_v56 = vld [vmem:[#allocation66_spill] sm:$0xff]  ;;  %v3627_v32 = vld [vmem:[#allocation67_spill] sm:$0xff] }
  0xb4   :  { %3583 = vst [vmem:[#allocation27_spill] sm:$0xff] %v2277_v5  ;;  %v3596_v5 = vcvt.s32.f32 %v3595_v21  ;;  %v548_v52 = vmul.f32 0.587, %v3604_v10  ;;  %v554_v10 = vmul.f32 0.587, %v3616_v4  ;;  %v3628_v4 = vcvt.s32.f32 %v3627_v32 }
  0xb5   :  { %3586 = vst [vmem:[#allocation28_spill] sm:$0xff] %v2282_v48  ;;  %v2293_v8 = vmul.f32 0.299, %v3593_v42  ;;  %v547_v20 = vmul.f32 0.587, %v3602_v44  ;;  %v2320_v42 = vadd.f32 %v543_v28, %v2087_v53  ;;  %v3629_v28 = vld [vmem:[#allocation68_spill] sm:$0xff] }
  0xb6   :  { %3589 = vst [vmem:[#allocation29_spill] sm:$0xff] %v2286_v43  ;;  %v544_v35 = vmul.f32 0.587, %v3596_v5  ;;  %v546_v43 = vmul.f32 0.587, %v3600_v6  ;;  %v3607_v5 = vld [vmem:[#allocation58_spill] sm:$0xff]  ;;  %v3630_v53 = vcvt.s32.f32 %v3629_v28 }
  0xb7   :  { %3594 = vst [vmem:[#allocation30_spill] sm:$0xff] %v2293_v8  ;;  %v3606_v8 = vcvt.s32.f32 %v3605_v39  ;;  %v3608_v22 = vcvt.s32.f32 %v3607_v5  ;;  %v551_v48 = vmul.f32 0.587, %v3610_v3  ;;  %v552_v6 = vmul.f32 0.587, %v3612_v31  ;;  %v3618_v39 = vld [vmem:[#allocation63_spill] sm:$0xff] }
  0xb8   :  { %v553_v44 = vmul.f32 0.587, %v3614_v26  ;;  %3617 = vst [vmem:[#allocation31_spill] sm:$0xff] %v2320_v42  ;;  %v3620_v5 = vld [vmem:[#allocation64_spill] sm:$0xff]  ;;  %v3623_v3 = vcvt.s32.f32 %v3622_v13  ;;  %v2329_v19 = vadd.f32 %v544_v35, %v2091_v57  ;;  %v3626_v31 = vcvt.s32.f32 %v3625_v56  ;;  %v3634_v13 = vld [vmem:[#allocation70_spill] sm:$0xff]  ;;  %v3636_v57 = vld [vmem:[#allocation71_spill] sm:$0xff] }
  0xb9   :  { %v549_v21 = vmul.f32 0.587, %v3606_v8  ;;  %v550_v45 = vmul.f32 0.587, %v3608_v22  ;;  %v3619_v8 = vcvt.s32.f32 %v3618_v39  ;;  %v3621_v22 = vcvt.s32.f32 %v3620_v5  ;;  %v3641_v28 = vld [vmem:[#allocation73_spill] sm:$0xff] }
  0xba   :  { %v557_v0 = vmul.f32 0.587, %v3623_v3  ;;  %3624 = vst [vmem:[#allocation32_spill] sm:$0xff] %v2329_v19  ;;  %v558_v26 = vmul.f32 0.587, %v3626_v31  ;;  %v2338_v39 = vadd.f32 %v545_v17, %v2095_v46  ;;  %v3635_v3 = vcvt.s32.f32 %v3634_v13  ;;  %v3639_v31 = vld [vmem:[#allocation72_spill] sm:$0xff] }
  0xbb   :  { %v555_v54 = vmul.f32 0.587, %v3619_v8  ;;  %v556_v59 = vmul.f32 0.587, %v3621_v22  ;;  %v559_v7 = vmul.f32 0.587, %v3628_v4  ;;  %v3637_v35 = vcvt.s32.f32 %v3636_v57 }
  0xbc   :  { %v560_v42 = vmul.f32 0.587, %v3630_v53  ;;  %3631 = vst [vmem:[#allocation33_spill] sm:$0xff] %v2338_v39  ;;  %v3632_v8 = vld [vmem:[#allocation69_spill] sm:$0xff]  ;;  %v562_v41 = vmul.f32 0.587, %v3635_v3  ;;  %v2347_v56 = vadd.f32 %v546_v43, %v2100_v55  ;;  %v3640_v32 = vcvt.s32.f32 %v3639_v31 }
  0xbd   :  { %v3633_v5 = vcvt.s32.f32 %v3632_v8  ;;  %v563_v19 = vmul.f32 0.587, %v3637_v35  ;;  %v3642_v53 = vcvt.s32.f32 %v3641_v28  ;;  %v3643_v46 = vld [vmem:[#allocation74_spill] sm:$0xff]  ;;  %v2356_v8 = vadd.f32 %v547_v20, %v2104_v1  ;;  %v3648_v57 = vld [vmem:[#allocation76_spill] sm:$0xff]  ;;  %v3650_v43 = vld [vmem:[#allocation77_spill] sm:$0xff] }
  0xbe   :  { %3638 = vst [vmem:[#allocation34_spill] sm:$0xff] %v2347_v56  ;;  %v564_v4 = vmul.f32 0.587, %v3640_v32  ;;  %v3644_v17 = vcvt.s32.f32 %v3643_v46  ;;  %v3649_v35 = vcvt.s32.f32 %v3648_v57  ;;  %v3651_v55 = vcvt.s32.f32 %v3650_v43  ;;  %v3653_v32 = vld [vmem:[#allocation78_spill] sm:$0xff]  ;;  %v3655_v46 = vld [vmem:[#allocation79_spill] sm:$0xff]  ;;  %v3657_v1 = vld [vmem:[#allocation80_spill] sm:$0xff] }
  0xbf   :  { %v561_v22 = vmul.f32 0.587, %v3633_v5  ;;  %v565_v61 = vmul.f32 0.587, %v3642_v53  ;;  %3645 = vst [vmem:[#allocation35_spill] sm:$0xff] %v2356_v8  ;;  %v3646_v5 = vld [vmem:[#allocation75_spill] sm:$0xff]  ;;  %v2365_v31 = vadd.f32 %v548_v52, %v2108_v40  ;;  %v3654_v28 = vcvt.s32.f32 %v3653_v32 }
  0xc0   :  { %v566_v39 = vmul.f32 0.587, %v3644_v17  ;;  %v3647_v13 = vcvt.s32.f32 %v3646_v5  ;;  %v568_v15 = vmul.f32 0.587, %v3649_v35  ;;  %v569_v56 = vmul.f32 0.587, %v3651_v55 }
  0xc1   :  { %3652 = vst [vmem:[#allocation36_spill] sm:$0xff] %v2365_v31  ;;  %v570_v53 = vmul.f32 0.587, %v3654_v28  ;;  %v3656_v17 = vcvt.s32.f32 %v3655_v46  ;;  %v3658_v20 = vcvt.s32.f32 %v3657_v1  ;;  %v2374_v5 = vadd.f32 %v549_v21, %v2113_v58  ;;  %v3662_v43 = vld [vmem:[#allocation82_spill] sm:$0xff]  ;;  %v3664_v40 = vld [vmem:[#allocation83_spill] sm:$0xff]  ;;  %v3667_v28 = vld [vmem:[#allocation84_spill] sm:$0xff] }
  0xc2   :  { %v567_v3 = vmul.f32 0.587, %v3647_v13  ;;  %v3660_v13 = vld [vmem:[#allocation81_spill] sm:$0xff]  ;;  %v3663_v55 = vcvt.s32.f32 %v3662_v43  ;;  %v3665_v52 = vcvt.s32.f32 %v3664_v40  ;;  %v2383_v32 = vadd.f32 %v550_v45, %v2117_v30  ;;  %v3671_v58 = vld [vmem:[#allocation86_spill] sm:$0xff]  ;;  %v3676_v40 = vld [vmem:[#allocation88_spill] sm:$0xff] }
  0xc3   :  { %v571_v38 = vmul.f32 0.587, %v3656_v17  ;;  %v572_v8 = vmul.f32 0.587, %v3658_v20  ;;  %3659 = vst [vmem:[#allocation37_spill] sm:$0xff] %v2374_v5  ;;  %v3661_v57 = vcvt.s32.f32 %v3660_v13  ;;  %v3668_v46 = vcvt.s32.f32 %v3667_v28  ;;  %v3669_v1 = vld [vmem:[#allocation85_spill] sm:$0xff] }
  0xc4   :  { %v574_v24 = vmul.f32 0.587, %v3663_v55  ;;  %v575_v31 = vmul.f32 0.587, %v3665_v52  ;;  %3666 = vst [vmem:[#allocation38_spill] sm:$0xff] %v2383_v32  ;;  %v3670_v20 = vcvt.s32.f32 %v3669_v1  ;;  %v3672_v21 = vcvt.s32.f32 %v3671_v58  ;;  %v3678_v30 = vld [vmem:[#allocation89_spill] sm:$0xff] }
  0xc5   :  { %v573_v35 = vmul.f32 0.587, %v3661_v57  ;;  %v576_v17 = vmul.f32 0.587, %v3668_v46  ;;  %v2392_v13 = vadd.f32 %v551_v48, %v2121_v29  ;;  %v3674_v57 = vld [vmem:[#allocation87_spill] sm:$0xff]  ;;  %v3677_v52 = vcvt.s32.f32 %v3676_v40  ;;  %v3681_v46 = vld [vmem:[#allocation90_spill] sm:$0xff] }
  0xc6   :  { %v577_v12 = vmul.f32 0.587, %v3670_v20  ;;  %v578_v5 = vmul.f32 0.587, %v3672_v21  ;;  %v3675_v43 = vcvt.s32.f32 %v3674_v57  ;;  %v3679_v45 = vcvt.s32.f32 %v3678_v30  ;;  %v3683_v58 = vld [vmem:[#allocation91_spill] sm:$0xff]  ;;  %v3685_v29 = vld [vmem:[#allocation92_spill] sm:$0xff] }
  0xc7   :  { %3673 = vst [vmem:[#allocation39_spill] sm:$0xff] %v2392_v13  ;;  %v580_v23 = vmul.f32 0.587, %v3677_v52  ;;  %v2401_v28 = vadd.f32 %v552_v6, %v2126_v27  ;;  %v3682_v1 = vcvt.s32.f32 %v3681_v46  ;;  %v3684_v21 = vcvt.s32.f32 %v3683_v58  ;;  %v3690_v30 = vld [vmem:[#allocation94_spill] sm:$0xff]  ;;  %v3692_v27 = vld [vmem:[#allocation95_spill] sm:$0xff] }
  0xc8   :  { %v579_v55 = vmul.f32 0.587, %v3675_v43  ;;  %v581_v32 = vmul.f32 0.587, %v3679_v45  ;;  %v3686_v48 = vcvt.s32.f32 %v3685_v29  ;;  %v2410_v57 = vadd.f32 %v553_v44, %v2130_v33  ;;  %v3688_v43 = vld [vmem:[#allocation93_spill] sm:$0xff]  ;;  %v3698_v33 = vld [vmem:[#allocation98_spill] sm:$0xff] }
  0xc9   :  { %3680 = vst [vmem:[#allocation40_spill] sm:$0xff] %v2401_v28  ;;  %v582_v20 = vmul.f32 0.587, %v3682_v1  ;;  %v583_v2 = vmul.f32 0.587, %v3684_v21  ;;  %v3689_v40 = vcvt.s32.f32 %v3688_v43  ;;  %v3691_v45 = vcvt.s32.f32 %v3690_v30  ;;  %v3694_v1 = vld [vmem:[#allocation96_spill] sm:$0xff] }
  0xca   :  { %v584_v13 = vmul.f32 0.587, %v3686_v48  ;;  %3687 = vst [vmem:[#allocation41_spill] sm:$0xff] %v2410_v57  ;;  %v3693_v6 = vcvt.s32.f32 %v3692_v27  ;;  %v2419_v46 = vadd.f32 %v554_v10, %v2134_v16  ;;  %v3695_v58 = vcvt.s32.f32 %v3694_v1  ;;  %v3696_v29 = vld [vmem:[#allocation97_spill] sm:$0xff] }
  0xcb   :  { %v585_v52 = vmul.f32 0.587, %v3689_v40  ;;  %v586_v11 = vmul.f32 0.587, %v3691_v45  ;;  %v3697_v48 = vcvt.s32.f32 %v3696_v29  ;;  %v3699_v44 = vcvt.s32.f32 %v3698_v33 }
  0xcc   :  { %v587_v28 = vmul.f32 0.587, %v3693_v6  ;;  %v588_v21 = vmul.f32 0.587, %v3695_v58  ;;  %v2428_v43 = vadd.f32 %v555_v54, %v2139_v47  ;;  %v2431_v40 = vadd.f32 %v556_v59, %v2143_v51 }
  0xcd   :  { %v589_v49 = vmul.f32 0.587, %v3697_v48  ;;  %v590_v57 = vmul.f32 0.587, %v3699_v44  ;;  %v2434_v30 = vadd.f32 %v557_v0, %v2147_v25  ;;  %v2437_v16 = vadd.f32 %v558_v26, %v2152_v62  ;;  %v3717_v26 = vld [vmem:[#allocation16_spill] sm:$0xff] }
  0xce   :  { %v2440_v10 = vadd.f32 %v559_v7, %v2156_v14  ;;  %v2443_v45 = vadd.f32 %v560_v42, %v2160_v36  ;;  %v2446_v27 = vadd.f32 %v561_v22, %v2165_v60  ;;  %v2449_v54 = vadd.f32 %v562_v41, %v2169_v34  ;;  %v3701_v14 = vld [vmem:[#allocation8_spill] sm:$0xff]  ;;  %v3703_v34 = vld [vmem:[#allocation9_spill] sm:$0xff]  ;;  %v3707_v60 = vld [vmem:[#allocation11_spill] sm:$0xff] }
  0xcf   :  { %v2452_v51 = vadd.f32 %v563_v19, %v2173_v18  ;;  %v2455_v25 = vadd.f32 %v564_v4, %v2178_v63  ;;  %v2458_v59 = vadd.f32 %v565_v61, %v2182_v37  ;;  %v2461_v7 = vadd.f32 %v566_v39, %v2186_v9  ;;  %v3705_v18 = vld [vmem:[#allocation10_spill] sm:$0xff]  ;;  %v3709_v37 = vld [vmem:[#allocation12_spill] sm:$0xff]  ;;  %v3711_v9 = vld [vmem:[#allocation13_spill] sm:$0xff] }
  0xd0   :  { %v2464_v36 = vadd.f32 %v567_v3, %v2191_v50  ;;  %v2467_v47 = vadd.f32 %v568_v15, %v3701_v14  ;;  %v2470_v41 = vadd.f32 %v569_v56, %v3703_v34  ;;  %v2473_v62 = vadd.f32 %v570_v53, %v3705_v18  ;;  %v3713_v50 = vld [vmem:[#allocation14_spill] sm:$0xff]  ;;  %v3715_v15 = vld [vmem:[#allocation15_spill] sm:$0xff]  ;;  %v3719_v22 = vld [vmem:[#allocation17_spill] sm:$0xff] }
  0xd1   :  { %v2476_v63 = vadd.f32 %v571_v38, %v3707_v60  ;;  %v2479_v61 = vadd.f32 %v572_v8, %v3709_v37  ;;  %v2482_v0 = vadd.f32 %v573_v35, %v3711_v9  ;;  %v2485_v42 = vadd.f32 %v574_v24, %v3713_v50  ;;  %v3721_v38 = vld [vmem:[#allocation18_spill] sm:$0xff]  ;;  %v3723_v8 = vld [vmem:[#allocation19_spill] sm:$0xff]  ;;  %v3725_v53 = vld [vmem:[#allocation20_spill] sm:$0xff] }
  0xd2   :  { %3700 = vst [vmem:[#allocation42_spill] sm:$0xff] %v2464_v36  ;;  %v2488_v19 = vadd.f32 %v575_v31, %v3715_v15  ;;  %v2491_v39 = vadd.f32 %v576_v17, %v3717_v26  ;;  %v2494_v56 = vadd.f32 %v577_v12, %v3719_v22  ;;  %v2497_v4 = vadd.f32 %v578_v5, %v3721_v38  ;;  %v3727_v24 = vld [vmem:[#allocation21_spill] sm:$0xff]  ;;  %v3729_v31 = vld [vmem:[#allocation22_spill] sm:$0xff]  ;;  %v3731_v17 = vld [vmem:[#allocation99_spill] sm:$0xff] }
  0xd3   :  { %3702 = vst [vmem:[#allocation43_spill] sm:$0xff] %v2467_v47  ;;  %v2500_v3 = vadd.f32 %v579_v55, %v3723_v8  ;;  %v2503_v35 = vadd.f32 %v580_v23, %v3725_v53  ;;  %v2506_v6 = vadd.f32 %v581_v32, %v3727_v24  ;;  %v2509_v1 = vadd.f32 %v582_v20, %v3729_v31  ;;  %v3733_v12 = vld [vmem:[#allocation23_spill] sm:$0xff]  ;;  %v3735_v5 = vld [vmem:[#allocation24_spill] sm:$0xff]  ;;  %v3737_v55 = vld [vmem:[#allocation25_spill] sm:$0xff] }
  0xd4   :  { %3704 = vst [vmem:[#allocation44_spill] sm:$0xff] %v2470_v41  ;;  %v3732_v58 = vcvt.s32.f32 %v3731_v17  ;;  %v2514_v48 = vadd.f32 %v583_v2, %v3733_v12  ;;  %v2517_v33 = vadd.f32 %v584_v13, %v3735_v5  ;;  %v2520_v44 = vadd.f32 %v585_v52, %v3737_v55  ;;  %v3739_v23 = vld [vmem:[#allocation100_spill] sm:$0xff]  ;;  %v3741_v32 = vld [vmem:[#allocation26_spill] sm:$0xff]  ;;  %v3743_v20 = vld [vmem:[#allocation27_spill] sm:$0xff] }
  0xd5   :  { %3706 = vst [vmem:[#allocation45_spill] sm:$0xff] %v2473_v62  ;;  %v3740_v14 = vcvt.s32.f32 %v3739_v23  ;;  %v2525_v18 = vadd.f32 %v586_v11, %v3741_v32  ;;  %v2528_v60 = vadd.f32 %v587_v28, %v3743_v20  ;;  %v3745_v37 = vld [vmem:[#allocation28_spill] sm:$0xff]  ;;  %v3747_v2 = vld [vmem:[#allocation101_spill] sm:$0xff]  ;;  %v3751_v52 = vld [vmem:[#allocation30_spill] sm:$0xff] }
  0xd6   :  { %3708 = vst [vmem:[#allocation46_spill] sm:$0xff] %v2476_v63  ;;  %v639_v29 = vmul.f32 0.114, %v3732_v58  ;;  %v2531_v9 = vadd.f32 %v588_v21, %v3745_v37  ;;  %v3748_v50 = vcvt.s32.f32 %v3747_v2  ;;  %v3749_v13 = vld [vmem:[#allocation29_spill] sm:$0xff]  ;;  %v2539_v22 = vadd.f32 %v590_v57, %v3751_v52  ;;  %v3753_v38 = vld [vmem:[#allocation102_spill] sm:$0xff]  ;;  %v3755_v11 = vld [vmem:[#allocation103_spill] sm:$0xff] }
  0xd7   :  { %3710 = vst [vmem:[#allocation47_spill] sm:$0xff] %v2479_v61  ;;  %v640_v34 = vmul.f32 0.114, %v3740_v14  ;;  %v2536_v26 = vadd.f32 %v589_v49, %v3749_v13  ;;  %v3754_v8 = vcvt.s32.f32 %v3753_v38  ;;  %v3756_v24 = vcvt.s32.f32 %v3755_v11  ;;  %v3757_v28 = vld [vmem:[#allocation104_spill] sm:$0xff]  ;;  %v3759_v21 = vld [vmem:[#allocation105_spill] sm:$0xff]  ;;  %v3761_v55 = vld [vmem:[#allocation106_spill] sm:$0xff] }
  0xd8   :  { %3712 = vst [vmem:[#allocation48_spill] sm:$0xff] %v2482_v0  ;;  %v641_v15 = vmul.f32 0.114, %v3748_v50  ;;  %v3758_v17 = vcvt.s32.f32 %v3757_v28  ;;  %v3760_v12 = vcvt.s32.f32 %v3759_v21  ;;  %v3762_v23 = vcvt.s32.f32 %v3761_v55  ;;  %v3763_v49 = vld [vmem:[#allocation31_spill] sm:$0xff]  ;;  %v3767_v2 = vld [vmem:[#allocation108_spill] sm:$0xff]  ;;  %v3769_v52 = vld [vmem:[#allocation109_spill] sm:$0xff] }
  0xd9   :  { %3714 = vst [vmem:[#allocation49_spill] sm:$0xff] %v2485_v42  ;;  %v642_v53 = vmul.f32 0.114, %v3754_v8  ;;  %v643_v31 = vmul.f32 0.114, %v3756_v24  ;;  %v2552_v32 = vadd.f32 %v639_v29, %v3763_v49  ;;  %v3765_v57 = vld [vmem:[#allocation107_spill] sm:$0xff]  ;;  %v3768_v50 = vcvt.s32.f32 %v3767_v2 }
  0xda   :  { %3716 = vst [vmem:[#allocation51_spill] sm:$0xff] %v2488_v19  ;;  %v644_v58 = vmul.f32 0.114, %v3758_v17  ;;  %v645_v5 = vmul.f32 0.114, %v3760_v12  ;;  %v3766_v20 = vcvt.s32.f32 %v3765_v57  ;;  %v3770_v38 = vcvt.s32.f32 %v3769_v52  ;;  %v3771_v11 = vld [vmem:[#allocation32_spill] sm:$0xff] }
  0xdb   :  { %3718 = vst [vmem:[#allocation50_spill] sm:$0xff] %v2491_v39  ;;  %v646_v14 = vmul.f32 0.114, %v3762_v23  ;;  %v648_v13 = vmul.f32 0.114, %v3768_v50  ;;  %v2561_v24 = vadd.f32 %v640_v34, %v3771_v11  ;;  %v3773_v28 = vld [vmem:[#allocation110_spill] sm:$0xff] }
  0xdc   :  { %3720 = vst [vmem:[#allocation52_spill] sm:$0xff] %v2494_v56  ;;  %v647_v37 = vmul.f32 0.114, %v3766_v20  ;;  %v649_v8 = vmul.f32 0.114, %v3770_v38  ;;  %v3774_v17 = vcvt.s32.f32 %v3773_v28  ;;  %v3775_v12 = vld [vmem:[#allocation111_spill] sm:$0xff] }
  0xdd   :  { %3722 = vst [vmem:[#allocation53_spill] sm:$0xff] %v2497_v4  ;;  %v3776_v55 = vcvt.s32.f32 %v3775_v12  ;;  %v3777_v29 = vld [vmem:[#allocation112_spill] sm:$0xff]  ;;  %v3779_v57 = vld [vmem:[#allocation33_spill] sm:$0xff]  ;;  %v3783_v52 = vld [vmem:[#allocation114_spill] sm:$0xff] }
  0xde   :  { %3724 = vst [vmem:[#allocation54_spill] sm:$0xff] %v2500_v3  ;;  %v650_v21 = vmul.f32 0.114, %v3774_v17  ;;  %v3778_v49 = vcvt.s32.f32 %v3777_v29  ;;  %v2570_v20 = vadd.f32 %v641_v15, %v3779_v57  ;;  %v3781_v2 = vld [vmem:[#allocation113_spill] sm:$0xff]  ;;  %v3784_v38 = vcvt.s32.f32 %v3783_v52  ;;  %v3785_v34 = vld [vmem:[#allocation115_spill] sm:$0xff]  ;;  %v3787_v28 = vld [vmem:[#allocation34_spill] sm:$0xff] }
  0xdf   :  { %3726 = vst [vmem:[#allocation55_spill] sm:$0xff] %v2503_v35  ;;  %v651_v23 = vmul.f32 0.114, %v3776_v55  ;;  %v3782_v50 = vcvt.s32.f32 %v3781_v2  ;;  %v3786_v11 = vcvt.s32.f32 %v3785_v34  ;;  %v2579_v17 = vadd.f32 %v642_v53, %v3787_v28  ;;  %v3789_v12 = vld [vmem:[#allocation116_spill] sm:$0xff]  ;;  %v3791_v29 = vld [vmem:[#allocation117_spill] sm:$0xff]  ;;  %v3793_v15 = vld [vmem:[#allocation118_spill] sm:$0xff] }
  0xe0   :  { %3728 = vst [vmem:[#allocation56_spill] sm:$0xff] %v2506_v6  ;;  %v3790_v55 = vcvt.s32.f32 %v3789_v12  ;;  %v3794_v57 = vcvt.s32.f32 %v3793_v15  ;;  %v3795_v2 = vld [vmem:[#allocation35_spill] sm:$0xff]  ;;  %v3799_v34 = vld [vmem:[#allocation120_spill] sm:$0xff]  ;;  %v3801_v53 = vld [vmem:[#allocation121_spill] sm:$0xff] }
  0xe1   :  { %3730 = vst [vmem:[#allocation57_spill] sm:$0xff] %v2509_v1  ;;  %v3797_v52 = vld [vmem:[#allocation119_spill] sm:$0xff]  ;;  %v3802_v28 = vcvt.s32.f32 %v3801_v53  ;;  %v3803_v12 = vld [vmem:[#allocation36_spill] sm:$0xff]  ;;  %v3815_v53 = vld [vmem:[#allocation126_spill] sm:$0xff] }
  0xe2   :  { %3734 = vst [vmem:[#allocation58_spill] sm:$0xff] %v2514_v48  ;;  %v3807_v15 = vld [vmem:[#allocation123_spill] sm:$0xff]  ;;  %v3836_v39 = vld [vmem:[#allocation134_spill] sm:$0xff]  ;;  %v3840_v42 = vld [vmem:[#allocation136_spill] sm:$0xff] }
  0xe3   :  { %3736 = vst [vmem:[#allocation59_spill] sm:$0xff] %v2517_v33  ;;  %v3838_v19 = vld [vmem:[#allocation135_spill] sm:$0xff] }
  0xe4   :  { %3738 = vst [vmem:[#allocation60_spill] sm:$0xff] %v2520_v44 }
  0xe5   :  { %3742 = vst [vmem:[#allocation61_spill] sm:$0xff] %v2525_v18 }
  0xe6   :  { %3744 = vst [vmem:[#allocation62_spill] sm:$0xff] %v2528_v60 }
  0xe7   :  { %3746 = vst [vmem:[#allocation63_spill] sm:$0xff] %v2531_v9  ;;  %v656_v9 = vmul.f32 0.114, %v3790_v55  ;;  %v2597_v55 = vadd.f32 %v644_v58, %v3803_v12  ;;  %v3817_v58 = vld [vmem:[#allocation127_spill] sm:$0xff] }
  0xe8   :  { %3750 = vst [vmem:[#allocation64_spill] sm:$0xff] %v2536_v26  ;;  %v654_v26 = vmul.f32 0.114, %v3784_v38  ;;  %v3798_v38 = vcvt.s32.f32 %v3797_v52  ;;  %v3811_v52 = vld [vmem:[#allocation37_spill] sm:$0xff]  ;;  %v3818_v12 = vcvt.s32.f32 %v3817_v58  ;;  %v3831_v58 = vld [vmem:[#allocation132_spill] sm:$0xff] }
  0xe9   :  { %3752 = vst [vmem:[#allocation65_spill] sm:$0xff] %v2539_v22  ;;  %v653_v22 = vmul.f32 0.114, %v3782_v50  ;;  %v2588_v50 = vadd.f32 %v643_v31, %v3795_v2  ;;  %v3809_v31 = vld [vmem:[#allocation124_spill] sm:$0xff] }
  0xea   :  { %3764 = vst [vmem:[#allocation66_spill] sm:$0xff] %v2552_v32  ;;  %v652_v32 = vmul.f32 0.114, %v3778_v49  ;;  %v3792_v49 = vcvt.s32.f32 %v3791_v29  ;;  %v659_v18 = vmul.f32 0.114, %v3798_v38  ;;  %v3805_v29 = vld [vmem:[#allocation122_spill] sm:$0xff]  ;;  %v3810_v2 = vcvt.s32.f32 %v3809_v31 }
  0xeb   :  { %3772 = vst [vmem:[#allocation67_spill] sm:$0xff] %v2561_v24  ;;  %v655_v24 = vmul.f32 0.114, %v3786_v11  ;;  %v3800_v11 = vcvt.s32.f32 %v3799_v34  ;;  %v2606_v38 = vadd.f32 %v645_v5, %v3811_v52  ;;  %v3813_v34 = vld [vmem:[#allocation125_spill] sm:$0xff]  ;;  %v3825_v5 = vld [vmem:[#allocation130_spill] sm:$0xff] }
  0xec   :  { %3780 = vst [vmem:[#allocation68_spill] sm:$0xff] %v2570_v20  ;;  %v657_v60 = vmul.f32 0.114, %v3792_v49  ;;  %v658_v20 = vmul.f32 0.114, %v3794_v57  ;;  %v3806_v49 = vcvt.s32.f32 %v3805_v29  ;;  %v3808_v57 = vcvt.s32.f32 %v3807_v15  ;;  %v3819_v29 = vld [vmem:[#allocation38_spill] sm:$0xff] }
  0xed   :  { %3788 = vst [vmem:[#allocation69_spill] sm:$0xff] %v2579_v17  ;;  %v660_v44 = vmul.f32 0.114, %v3800_v11  ;;  %v661_v17 = vmul.f32 0.114, %v3802_v28  ;;  %v3814_v11 = vcvt.s32.f32 %v3813_v34  ;;  %v3816_v28 = vcvt.s32.f32 %v3815_v53  ;;  %v3821_v15 = vld [vmem:[#allocation128_spill] sm:$0xff] }
  0xee   :  { %3796 = vst [vmem:[#allocation70_spill] sm:$0xff] %v2588_v50  ;;  %v662_v33 = vmul.f32 0.114, %v3806_v49  ;;  %v663_v48 = vmul.f32 0.114, %v3808_v57  ;;  %v2615_v49 = vadd.f32 %v646_v14, %v3819_v29  ;;  %v3822_v57 = vcvt.s32.f32 %v3821_v15  ;;  %v3823_v31 = vld [vmem:[#allocation129_spill] sm:$0xff] }
  0xef   :  { %3804 = vst [vmem:[#allocation71_spill] sm:$0xff] %v2597_v55  ;;  %v664_v50 = vmul.f32 0.114, %v3810_v2  ;;  %v665_v1 = vmul.f32 0.114, %v3814_v11  ;;  %v3824_v2 = vcvt.s32.f32 %v3823_v31  ;;  %v3826_v52 = vcvt.s32.f32 %v3825_v5  ;;  %v3827_v34 = vld [vmem:[#allocation39_spill] sm:$0xff] }
  0xf0   :  { %3812 = vst [vmem:[#allocation72_spill] sm:$0xff] %v2606_v38  ;;  %v666_v6 = vmul.f32 0.114, %v3816_v28  ;;  %v667_v55 = vmul.f32 0.114, %v3818_v12  ;;  %v2624_v11 = vadd.f32 %v647_v37, %v3827_v34  ;;  %v3829_v53 = vld [vmem:[#allocation131_spill] sm:$0xff]  ;;  %v3832_v12 = vcvt.s32.f32 %v3831_v58 }
  0xf1   :  { %3820 = vst [vmem:[#allocation73_spill] sm:$0xff] %v2615_v49  ;;  %v668_v35 = vmul.f32 0.114, %v3822_v57  ;;  %v669_v3 = vmul.f32 0.114, %v3824_v2  ;;  %v3830_v28 = vcvt.s32.f32 %v3829_v53  ;;  %v3833_v14 = vld [vmem:[#allocation133_spill] sm:$0xff]  ;;  %v3837_v31 = vcvt.s32.f32 %v3836_v39 }
  0xf2   :  { %v670_v38 = vmul.f32 0.114, %v3826_v52  ;;  %3828 = vst [vmem:[#allocation74_spill] sm:$0xff] %v2624_v11  ;;  %v672_v56 = vmul.f32 0.114, %v3832_v12  ;;  %v3834_v29 = vcvt.s32.f32 %v3833_v14  ;;  %v3835_v15 = vld [vmem:[#allocation40_spill] sm:$0xff]  ;;  %v3839_v5 = vcvt.s32.f32 %v3838_v19 }
  0xf3   :  { %v671_v4 = vmul.f32 0.114, %v3830_v28  ;;  %v696_v57 = vadd.f32 %v648_v13, %v3835_v15  ;;  %v674_v2 = vmul.f32 0.114, %v3837_v31  ;;  %v3841_v37 = vcvt.s32.f32 %v3840_v42  ;;  %v3842_v11 = vld [vmem:[#allocation41_spill] sm:$0xff]  ;;  %v3845_v12 = vld [vmem:[#allocation138_spill] sm:$0xff] }
  0xf4   :  { %v673_v49 = vmul.f32 0.114, %v3834_v29  ;;  %v675_v52 = vmul.f32 0.114, %v3839_v5  ;;  %v697_v53 = vadd.f32 %v649_v8, %v3842_v11  ;;  %v3843_v28 = vld [vmem:[#allocation137_spill] sm:$0xff]  ;;  %v3846_v61 = vcvt.s32.f32 %v3845_v12  ;;  %v3847_v29 = vld [vmem:[#allocation139_spill] sm:$0xff] }
  0xf5   :  { %v676_v34 = vmul.f32 0.114, %v3841_v37  ;;  %v3844_v0 = vcvt.s32.f32 %v3843_v28  ;;  %v3848_v63 = vcvt.s32.f32 %v3847_v29  ;;  %v698_v39 = vadd.f32 %v650_v21, %v2419_v46  ;;  %v3849_v15 = vld [vmem:[#allocation140_spill] sm:$0xff]  ;;  %v3851_v5 = vld [vmem:[#allocation141_spill] sm:$0xff]  ;;  %v3853_v37 = vld [vmem:[#allocation142_spill] sm:$0xff] }
  0xf6   :  { %v678_v14 = vmul.f32 0.114, %v3846_v61  ;;  %v3850_v31 = vcvt.s32.f32 %v3849_v15  ;;  %v3852_v62 = vcvt.s32.f32 %v3851_v5  ;;  %v3854_v41 = vcvt.s32.f32 %v3853_v37  ;;  %v3857_v61 = vld [vmem:[#allocation144_spill] sm:$0xff]  ;;  %v3861_v15 = vld [vmem:[#allocation146_spill] sm:$0xff] }
  0xf7   :  { %v677_v58 = vmul.f32 0.114, %v3844_v0  ;;  %v679_v13 = vmul.f32 0.114, %v3848_v63  ;;  %v699_v11 = vadd.f32 %v651_v23, %v2428_v43  ;;  %v3855_v0 = vld [vmem:[#allocation143_spill] sm:$0xff]  ;;  %v3858_v47 = vcvt.s32.f32 %v3857_v61  ;;  %v3859_v63 = vld [vmem:[#allocation145_spill] sm:$0xff] }
  0xf8   :  { %v680_v19 = vmul.f32 0.114, %v3850_v31  ;;  %v681_v42 = vmul.f32 0.114, %v3852_v62  ;;  %v682_v8 = vmul.f32 0.114, %v3854_v41  ;;  %v3856_v28 = vcvt.s32.f32 %v3855_v0 }
  0xf9   :  { %v684_v29 = vmul.f32 0.114, %v3858_v47  ;;  %v3860_v36 = vcvt.s32.f32 %v3859_v63  ;;  %v700_v21 = vadd.f32 %v652_v32, %v2431_v40  ;;  %v3862_v31 = vcvt.s32.f32 %v3861_v15  ;;  %v3874_v61 = vld [vmem:[#allocation53_spill] sm:$0xff]  ;;  %v3875_v63 = vld [vmem:[#allocation54_spill] sm:$0xff]  ;;  %v3876_v15 = vld [vmem:[#allocation55_spill] sm:$0xff] }
  0xfa   :  { %v683_v12 = vmul.f32 0.114, %v3856_v28  ;;  %v701_v62 = vadd.f32 %v653_v22, %v2434_v30  ;;  %v702_v41 = vadd.f32 %v654_v26, %v2437_v16  ;;  %v703_v43 = vadd.f32 %v655_v24, %v2440_v10  ;;  %v3863_v28 = vld [vmem:[#allocation42_spill] sm:$0xff]  ;;  %v3864_v22 = vld [vmem:[#allocation43_spill] sm:$0xff]  ;;  %v3865_v26 = vld [vmem:[#allocation44_spill] sm:$0xff] }
  0xfb   :  { %v685_v46 = vmul.f32 0.114, %v3860_v36  ;;  %v686_v5 = vmul.f32 0.114, %v3862_v31  ;;  %v704_v23 = vadd.f32 %v656_v9, %v2443_v45  ;;  %v705_v37 = vadd.f32 %v657_v60, %v2446_v27  ;;  %v3866_v24 = vld [vmem:[#allocation45_spill] sm:$0xff]  ;;  %v3867_v9 = vld [vmem:[#allocation46_spill] sm:$0xff] }
  0xfc   :  { %v706_v47 = vadd.f32 %v658_v20, %v2449_v54  ;;  %v707_v0 = vadd.f32 %v659_v18, %v2452_v51  ;;  %v708_v36 = vadd.f32 %v660_v44, %v2455_v25  ;;  %v709_v40 = vadd.f32 %v661_v17, %v2458_v59  ;;  %v3868_v60 = vld [vmem:[#allocation47_spill] sm:$0xff]  ;;  %v3869_v20 = vld [vmem:[#allocation48_spill] sm:$0xff]  ;;  %v3870_v18 = vld [vmem:[#allocation49_spill] sm:$0xff] }
  0xfd   :  { %v710_v32 = vadd.f32 %v662_v33, %v2461_v7  ;;  %v711_v30 = vadd.f32 %v663_v48, %v3863_v28  ;;  %v712_v16 = vadd.f32 %v664_v50, %v3864_v22  ;;  %v713_v10 = vadd.f32 %v665_v1, %v3865_v26  ;;  %v3871_v44 = vld [vmem:[#allocation51_spill] sm:$0xff]  ;;  %v3872_v17 = vld [vmem:[#allocation50_spill] sm:$0xff]  ;;  %v3873_v33 = vld [vmem:[#allocation52_spill] sm:$0xff] }
  0xfe   :  { %v714_v45 = vadd.f32 %v666_v6, %v3866_v24  ;;  %v715_v27 = vadd.f32 %v667_v55, %v3867_v9  ;;  %v716_v54 = vadd.f32 %v668_v35, %v3868_v60  ;;  %v717_v51 = vadd.f32 %v669_v3, %v3869_v20  ;;  %v3877_v31 = vld [vmem:[#allocation56_spill] sm:$0xff]  ;;  %v3878_v28 = vld [vmem:[#allocation57_spill] sm:$0xff]  ;;  %v3879_v22 = vld [vmem:[#allocation58_spill] sm:$0xff] }
  0xff   :  { %v718_v25 = vadd.f32 %v670_v38, %v3870_v18  ;;  %v719_v59 = vadd.f32 %v671_v4, %v3871_v44  ;;  %v720_v7 = vadd.f32 %v672_v56, %v3872_v17  ;;  %v721_v48 = vadd.f32 %v673_v49, %v3873_v33  ;;  %v3880_v26 = vld [vmem:[#allocation59_spill] sm:$0xff]  ;;  %v3881_v24 = vld [vmem:[#allocation60_spill] sm:$0xff]  ;;  %v3882_v9 = vld [vmem:[#allocation61_spill] sm:$0xff] }
 0x100   :  { %v722_v50 = vadd.f32 %v674_v2, %v3874_v61  ;;  %v723_v1 = vadd.f32 %v675_v52, %v3875_v63  ;;  %v724_v6 = vadd.f32 %v676_v34, %v3876_v15  ;;  %v725_v55 = vadd.f32 %v677_v58, %v3877_v31  ;;  %v3883_v60 = vld [vmem:[#allocation62_spill] sm:$0xff]  ;;  %v3884_v20 = vld [vmem:[#allocation63_spill] sm:$0xff]  ;;  %v3885_v18 = vld [vmem:[#allocation64_spill] sm:$0xff] }
 0x101   :  { %v726_v35 = vadd.f32 %v678_v14, %v3878_v28  ;;  %v727_v3 = vadd.f32 %v679_v13, %v3879_v22  ;;  %v728_v38 = vadd.f32 %v680_v19, %v3880_v26  ;;  %v729_v4 = vadd.f32 %v681_v42, %v3881_v24  ;;  %v3886_v44 = vld [vmem:[#allocation65_spill] sm:$0xff]  ;;  %v3887_v17 = vld [vmem:[#allocation66_spill] sm:$0xff]  ;;  %v3888_v33 = vld [vmem:[#allocation67_spill] sm:$0xff] }
 0x102   :  { %v730_v56 = vadd.f32 %v682_v8, %v3882_v9  ;;  %v731_v49 = vadd.f32 %v683_v12, %v3883_v60  ;;  %v732_v2 = vadd.f32 %v684_v29, %v3884_v20  ;;  %v733_v52 = vadd.f32 %v685_v46, %v3885_v18  ;;  %v3889_v61 = vld [vmem:[#allocation68_spill] sm:$0xff]  ;;  %v3890_v63 = vld [vmem:[#allocation69_spill] sm:$0xff]  ;;  %v3891_v15 = vld [vmem:[#allocation70_spill] sm:$0xff] }
 0x103   :  { %v734_v34 = vadd.f32 %v686_v5, %v3886_v44  ;;  %v735_v58 = vadd.f32 0.5, %v3887_v17  ;;  %v736_v14 = vadd.f32 0.5, %v3888_v33  ;;  %v737_v13 = vadd.f32 0.5, %v3889_v61  ;;  %v3892_v31 = vld [vmem:[#allocation71_spill] sm:$0xff]  ;;  %v3893_v28 = vld [vmem:[#allocation72_spill] sm:$0xff]  ;;  %v3894_v22 = vld [vmem:[#allocation73_spill] sm:$0xff] }
 0x104   :  { %v738_v19 = vadd.f32 0.5, %v3890_v63  ;;  %v739_v42 = vadd.f32 0.5, %v3891_v15  ;;  %v740_v8 = vadd.f32 0.5, %v3892_v31  ;;  %v741_v12 = vadd.f32 0.5, %v3893_v28  ;;  %v3895_v26 = vld [vmem:[#allocation74_spill] sm:$0xff] }
 0x105   :  { %v742_v29 = vadd.f32 0.5, %v3894_v22  ;;  %v743_v46 = vadd.f32 0.5, %v3895_v26  ;;  %v744_v24 = vadd.f32 0.5, %v696_v57  ;;  %v745_v5 = vadd.f32 0.5, %v697_v53 }
 0x106   :  { %v746_v9 = vadd.f32 0.5, %v698_v39  ;;  %v747_v60 = vadd.f32 0.5, %v699_v11  ;;  %v748_v20 = vadd.f32 0.5, %v700_v21  ;;  %v749_v18 = vadd.f32 0.5, %v701_v62 }
 0x107   :  { %v750_v44 = vadd.f32 0.5, %v702_v41  ;;  %v751_v17 = vadd.f32 0.5, %v703_v43  ;;  %v752_v33 = vadd.f32 0.5, %v704_v23  ;;  %v753_v61 = vadd.f32 0.5, %v705_v37 }
 0x108   :  { %v754_v63 = vadd.f32 0.5, %v706_v47  ;;  %v755_v15 = vadd.f32 0.5, %v707_v0  ;;  %v756_v31 = vadd.f32 0.5, %v708_v36  ;;  %v757_v28 = vadd.f32 0.5, %v709_v40 }
 0x109   :  { %v758_v22 = vadd.f32 0.5, %v710_v32  ;;  %v759_v26 = vadd.f32 0.5, %v711_v30  ;;  %v760_v57 = vadd.f32 0.5, %v712_v16  ;;  %v761_v53 = vadd.f32 0.5, %v713_v10 }
 0x10a   :  { %v762_v39 = vadd.f32 0.5, %v714_v45  ;;  %v763_v11 = vadd.f32 0.5, %v715_v27  ;;  %v764_v21 = vadd.f32 0.5, %v716_v54  ;;  %v765_v62 = vadd.f32 0.5, %v717_v51 }
 0x10b   :  { %v766_v41 = vadd.f32 0.5, %v718_v25  ;;  %v767_v43 = vadd.f32 0.5, %v719_v59  ;;  %v768_v23 = vadd.f32 0.5, %v720_v7  ;;  %v769_v37 = vadd.f32 0.5, %v721_v48 }
 0x10c   :  { %v770_v47 = vadd.f32 0.5, %v722_v50  ;;  %v771_v0 = vadd.f32 0.5, %v723_v1  ;;  %v772_v36 = vadd.f32 0.5, %v724_v6  ;;  %v773_v40 = vadd.f32 0.5, %v725_v55 }
 0x10d   :  { %v774_v32 = vadd.f32 0.5, %v726_v35  ;;  %v775_v30 = vadd.f32 0.5, %v727_v3  ;;  %v776_v16 = vadd.f32 0.5, %v728_v38  ;;  %v777_v10 = vadd.f32 0.5, %v729_v4 }
 0x10e   :  { %v778_v45 = vadd.f32 0.5, %v730_v56  ;;  %v779_v27 = vadd.f32 0.5, %v731_v49  ;;  %v780_v54 = vadd.f32 0.5, %v732_v2  ;;  %v781_v51 = vadd.f32 0.5, %v733_v52 }
 0x10f   :  { %v2706_v25 = vadd.f32 0.5, %v734_v34  ;;  %v2708_v59 = vclamp-gez-f32 %v735_v58, 255.0  ;;  %v2710_v7 = vclamp-gez-f32 %v736_v14, 255.0  ;;  %v2712_v48 = vclamp-gez-f32 %v737_v13, 255.0 }
 0x110   :  { %v2714_v50 = vclamp-gez-f32 %v738_v19, 255.0  ;;  %v2716_v1 = vclamp-gez-f32 %v739_v42, 255.0  ;;  %v2718_v6 = vclamp-gez-f32 %v740_v8, 255.0  ;;  %v2720_v55 = vclamp-gez-f32 %v741_v12, 255.0 }
 0x111   :  { %v2722_v35 = vclamp-gez-f32 %v742_v29, 255.0  ;;  %v2724_v3 = vclamp-gez-f32 %v743_v46, 255.0  ;;  %v2726_v38 = vclamp-gez-f32 %v744_v24, 255.0  ;;  %v2728_v4 = vclamp-gez-f32 %v745_v5, 255.0 }
 0x112   :  { %v2730_v56 = vclamp-gez-f32 %v746_v9, 255.0  ;;  %v2732_v49 = vclamp-gez-f32 %v747_v60, 255.0  ;;  %v2734_v2 = vclamp-gez-f32 %v748_v20, 255.0  ;;  %v2736_v52 = vclamp-gez-f32 %v749_v18, 255.0 }
 0x113   :  { %v2738_v34 = vclamp-gez-f32 %v750_v44, 255.0  ;;  %v2740_v58 = vclamp-gez-f32 %v751_v17, 255.0  ;;  %v2742_v14 = vclamp-gez-f32 %v752_v33, 255.0  ;;  %v2744_v13 = vclamp-gez-f32 %v753_v61, 255.0 }
 0x114   :  { %v2746_v19 = vclamp-gez-f32 %v754_v63, 255.0  ;;  %v2748_v42 = vclamp-gez-f32 %v755_v15, 255.0  ;;  %v2750_v8 = vclamp-gez-f32 %v756_v31, 255.0  ;;  %v2752_v12 = vclamp-gez-f32 %v757_v28, 255.0 }
 0x115   :  { %v2754_v29 = vclamp-gez-f32 %v758_v22, 255.0  ;;  %v2756_v46 = vclamp-gez-f32 %v759_v26, 255.0  ;;  %v2758_v24 = vclamp-gez-f32 %v760_v57, 255.0  ;;  %v2760_v5 = vclamp-gez-f32 %v761_v53, 255.0 }
 0x116   :  { %v2762_v9 = vclamp-gez-f32 %v762_v39, 255.0  ;;  %v2764_v60 = vclamp-gez-f32 %v763_v11, 255.0  ;;  %v2766_v20 = vclamp-gez-f32 %v764_v21, 255.0  ;;  %v2768_v18 = vclamp-gez-f32 %v765_v62, 255.0 }
 0x117   :  { %v2770_v44 = vclamp-gez-f32 %v766_v41, 255.0  ;;  %v2772_v17 = vclamp-gez-f32 %v767_v43, 255.0  ;;  %v2774_v33 = vclamp-gez-f32 %v768_v23, 255.0  ;;  %v2776_v61 = vclamp-gez-f32 %v769_v37, 255.0 }
 0x118   :  { %v2778_v63 = vclamp-gez-f32 %v770_v47, 255.0  ;;  %v2780_v15 = vclamp-gez-f32 %v771_v0, 255.0  ;;  %v2782_v31 = vclamp-gez-f32 %v772_v36, 255.0  ;;  %v2784_v28 = vclamp-gez-f32 %v773_v40, 255.0 }
 0x119   :  { %v2786_v22 = vclamp-gez-f32 %v774_v32, 255.0  ;;  %v2788_v26 = vclamp-gez-f32 %v775_v30, 255.0  ;;  %v2790_v57 = vclamp-gez-f32 %v776_v16, 255.0  ;;  %v2792_v53 = vclamp-gez-f32 %v777_v10, 255.0 }
 0x11a   :  { %v2794_v39 = vclamp-gez-f32 %v778_v45, 255.0  ;;  %v2796_v11 = vclamp-gez-f32 %v779_v27, 255.0  ;;  %v2798_v21 = vclamp-gez-f32 %v780_v54, 255.0  ;;  %v2800_v62 = vclamp-gez-f32 %v781_v51, 255.0 }
 0x11b   :  { %vm1139_vm0 = vcmp.lt.s32.totalorder %v2708_v59, 0  ;;  %v1140_v41 = vceil.f32 %v2708_v59  ;;  %v1141_v43 = vfloor.f32 %v2708_v59  ;;  %vm1144_vm1 = vcmp.lt.s32.totalorder %v2710_v7, 0 }
 0x11c   :  { %3896 = vst [vmem:[#allocation75_spill] sm:$0xff] %v2794_v39  ;;  %v1145_v23 = vceil.f32 %v2710_v7  ;;  %v1146_v37 = vfloor.f32 %v2710_v7  ;;  %vm1149_vm2 = vcmp.lt.s32.totalorder %v2712_v48, 0  ;;  %v1150_v47 = vceil.f32 %v2712_v48 }
 0x11d   :  { %3897 = vst [vmem:[#allocation76_spill] sm:$0xff] %v2796_v11  ;;  %v1151_v0 = vfloor.f32 %v2712_v48  ;;  %vm1154_vm3 = vcmp.lt.s32.totalorder %v2714_v50, 0  ;;  %v1155_v36 = vceil.f32 %v2714_v50  ;;  %v1156_v40 = vfloor.f32 %v2714_v50 }
 0x11e   :  { %3898 = vst [vmem:[#allocation77_spill] sm:$0xff] %v2798_v21  ;;  %vm1159_vm4 = vcmp.lt.s32.totalorder %v2716_v1, 0  ;;  %v1160_v32 = vceil.f32 %v2716_v1  ;;  %v1161_v30 = vfloor.f32 %v2716_v1  ;;  %vm1164_vm5 = vcmp.lt.s32.totalorder %v2718_v6, 0 }
 0x11f   :  { %3899 = vst [vmem:[#allocation78_spill] sm:$0xff] %v2800_v62  ;;  %v1165_v16 = vceil.f32 %v2718_v6  ;;  %v1166_v10 = vfloor.f32 %v2718_v6  ;;  %v1170_v45 = vceil.f32 %v2720_v55  ;;  %v1171_v27 = vfloor.f32 %v2720_v55 }
 0x120   :  { %v1175_v54 = vceil.f32 %v2722_v35  ;;  %v1176_v51 = vfloor.f32 %v2722_v35  ;;  %v2826_v62 = vsel %vm1139_vm0, %v1140_v41, %v1141_v43  ;;  %v2830_v21 = vsel %vm1144_vm1, %v1145_v23, %v1146_v37 }
 0x121   :  { %vm1169_vm6 = vcmp.lt.s32.totalorder %v2720_v55, 0  ;;  %vm1174_vm7 = vcmp.lt.s32.totalorder %v2722_v35, 0  ;;  %v2836_v11 = vsel %vm1149_vm2, %v1150_v47, %v1151_v0  ;;  %v2840_v39 = vsel %vm1154_vm3, %v1155_v36, %v1156_v40 }
 0x122   :  { %v1180_v59 = vceil.f32 %v2724_v3  ;;  %v1181_v41 = vfloor.f32 %v2724_v3  ;;  %v2845_v7 = vclamp-gez-f32 %v2706_v25, 255.0  ;;  %v2849_v55 = vsel %vm1159_vm4, %v1160_v32, %v1161_v30 }
 0x123   :  { %v2853_v48 = vsel %vm1164_vm5, %v1165_v16, %v1166_v10  ;;  %vm1179_vm8 = vcmp.lt.s32.totalorder %v2724_v3, 0  ;;  %v1143_v50 = vcvt.f32.s32 %v2826_v62  ;;  %v1148_v35 = vcvt.f32.s32 %v2830_v21 }
 0x124   :  { %v2858_v43 = vsel %vm1169_vm6, %v1170_v45, %v1171_v27  ;;  %v2860_v23 = vsel %vm1174_vm7, %v1175_v54, %v1176_v51  ;;  %v1185_v37 = vceil.f32 %v2726_v38  ;;  %v1186_v6 = vfloor.f32 %v2726_v38 }
 0x125   :  { %v2868_v0 = vsel %vm1179_vm8, %v1180_v59, %v1181_v41  ;;  %vm1184_vm9 = vcmp.lt.s32.totalorder %v2726_v38, 0  ;;  %vm1189_vm10 = vcmp.lt.s32.totalorder %v2728_v4, 0  ;;  %v1190_v32 = vceil.f32 %v2728_v4 }
 0x126   :  { %v1191_v30 = vfloor.f32 %v2728_v4  ;;  %vm1194_vm11 = vcmp.lt.s32.totalorder %v2730_v56, 0  ;;  %v1195_v16 = vceil.f32 %v2730_v56  ;;  %v1196_v10 = vfloor.f32 %v2730_v56 }
 0x127   :  { %v2880_v27 = vsel %vm1184_vm9, %v1185_v37, %v1186_v6  ;;  %vm1199_vm12 = vcmp.lt.s32.totalorder %v2732_v49, 0  ;;  %v1200_v38 = vceil.f32 %v2732_v49  ;;  %v1201_v54 = vfloor.f32 %v2732_v49 }
 0x128   :  { %vm1204_vm13 = vcmp.lt.s32.totalorder %v2734_v2, 0  ;;  %v1205_v51 = vceil.f32 %v2734_v2  ;;  %v1206_v59 = vfloor.f32 %v2734_v2  ;;  %v1210_v41 = vceil.f32 %v2736_v52 }
 0x129   :  { %v1211_v40 = vfloor.f32 %v2736_v52  ;;  %v1215_v45 = vceil.f32 %v2738_v34  ;;  %v1216_v37 = vfloor.f32 %v2738_v34  ;;  %vm1209_vm14 = vcmp.lt.s32.totalorder %v2736_v52, 0 }
 0x12a   :  { %vm1214_vm15 = vcmp.lt.s32.totalorder %v2738_v34, 0  ;;  %v1220_v6 = vceil.f32 %v2740_v58  ;;  %v1221_v36 = vfloor.f32 %v2740_v58  ;;  %v2898_v3 = vsel %vm1189_vm10, %v1190_v32, %v1191_v30 }
 0x12b   :  { %vm1219_vm0 = vcmp.lt.s32.totalorder %v2740_v58, 0  ;;  %v1225_v47 = vceil.f32 %v2742_v14  ;;  %v1226_v1 = vfloor.f32 %v2742_v14  ;;  %v2905_v25 = vsel %vm1194_vm11, %v1195_v16, %v1196_v10 }
 0x12c   :  { %v2909_v52 = vsel %vm1199_vm12, %v1200_v38, %v1201_v54  ;;  %v2913_v34 = vsel %vm1204_vm13, %v1205_v51, %v1206_v59  ;;  %vm1224_vm1 = vcmp.lt.s32.totalorder %v2742_v14, 0  ;;  %v2916_v4 = vsel %vm1209_vm14, %v1210_v41, %v1211_v40 }
 0x12d   :  { %v2918_v58 = vsel %vm1214_vm15, %v1215_v45, %v1216_v37  ;;  %v1230_v32 = vceil.f32 %v2744_v13  ;;  %v1231_v56 = vfloor.f32 %v2744_v13  ;;  %v2922_v30 = vsel %vm1219_vm0, %v1220_v6, %v1221_v36 }
 0x12e   :  { %vm1229_vm2 = vcmp.lt.s32.totalorder %v2744_v13, 0  ;;  %v1235_v49 = vceil.f32 %v2746_v19  ;;  %v1236_v2 = vfloor.f32 %v2746_v19  ;;  %v2929_v40 = vsel %vm1224_vm1, %v1225_v47, %v1226_v1 }
 0x12f   :  { %vm1234_vm3 = vcmp.lt.s32.totalorder %v2746_v19, 0  ;;  %v2938_v51 = vsel %vm1229_vm2, %v1230_v32, %v1231_v56  ;;  %vm1239_vm4 = vcmp.lt.s32.totalorder %v2748_v42, 0  ;;  %v1240_v19 = vceil.f32 %v2748_v42 }
 0x130   :  { %v2942_v47 = vsel %vm1234_vm3, %v1235_v49, %v1236_v2  ;;  %v1241_v59 = vfloor.f32 %v2748_v42  ;;  %v1245_v41 = vceil.f32 %v2750_v8  ;;  %v1246_v37 = vfloor.f32 %v2750_v8 }
 0x131   :  { %v1250_v6 = vceil.f32 %v2752_v12  ;;  %v1251_v54 = vfloor.f32 %v2752_v12  ;;  %vm1244_vm5 = vcmp.lt.s32.totalorder %v2750_v8, 0  ;;  %vm1249_vm6 = vcmp.lt.s32.totalorder %v2752_v12, 0 }
 0x132   :  { %v1255_v32 = vceil.f32 %v2754_v29  ;;  %v1256_v56 = vfloor.f32 %v2754_v29  ;;  %vm1254_vm7 = vcmp.lt.s32.totalorder %v2754_v29, 0  ;;  %v1260_v2 = vceil.f32 %v2756_v46 }
 0x133   :  { %v1261_v1 = vfloor.f32 %v2756_v46  ;;  %vm1259_vm8 = vcmp.lt.s32.totalorder %v2756_v46, 0  ;;  %v1265_v8 = vceil.f32 %v2758_v24  ;;  %v1266_v12 = vfloor.f32 %v2758_v24 }
 0x134   :  { %v2964_v13 = vsel %vm1239_vm4, %v1240_v19, %v1241_v59  ;;  %v2966_v36 = vsel %vm1244_vm5, %v1245_v41, %v1246_v37  ;;  %v2968_v49 = vsel %vm1249_vm6, %v1250_v6, %v1251_v54  ;;  %vm1264_vm9 = vcmp.lt.s32.totalorder %v2758_v24, 0 }
 0x135   :  { %v2971_v29 = vsel %vm1254_vm7, %v1255_v32, %v1256_v56  ;;  %vm1269_vm10 = vcmp.lt.s32.totalorder %v2760_v5, 0  ;;  %v1270_v46 = vceil.f32 %v2760_v5  ;;  %v1271_v38 = vfloor.f32 %v2760_v5 }
 0x136   :  { %v2976_v45 = vsel %vm1259_vm8, %v1260_v2, %v1261_v1  ;;  %vm1274_vm11 = vcmp.lt.s32.totalorder %v2762_v9, 0  ;;  %v1275_v42 = vceil.f32 %v2762_v9  ;;  %v1276_v19 = vfloor.f32 %v2762_v9 }
 0x137   :  { %v2981_v54 = vsel %vm1264_vm9, %v1265_v8, %v1266_v12  ;;  %vm1279_vm12 = vcmp.lt.s32.totalorder %v2764_v60, 0  ;;  %v1280_v24 = vceil.f32 %v2764_v60  ;;  %v1281_v59 = vfloor.f32 %v2764_v60 }
 0x138   :  { %v1285_v41 = vceil.f32 %v2766_v20  ;;  %v1286_v37 = vfloor.f32 %v2766_v20  ;;  %v1290_v1 = vceil.f32 %v2768_v18  ;;  %v1291_v6 = vfloor.f32 %v2768_v18 }
 0x139   :  { %vm1284_vm13 = vcmp.lt.s32.totalorder %v2766_v20, 0  ;;  %vm1289_vm14 = vcmp.lt.s32.totalorder %v2768_v18, 0  ;;  %v1295_v32 = vceil.f32 %v2770_v44  ;;  %v1296_v56 = vfloor.f32 %v2770_v44 }
 0x13a   :  { %v2998_v12 = vsel %vm1269_vm10, %v1270_v46, %v1271_v38  ;;  %vm1294_vm15 = vcmp.lt.s32.totalorder %v2770_v44, 0  ;;  %v3006_v14 = vsel %vm1274_vm11, %v1275_v42, %v1276_v19  ;;  %v3011_v8 = vsel %vm1279_vm12, %v1280_v24, %v1281_v59 }
 0x13b   :  { %v3013_v5 = vsel %vm1284_vm13, %v1285_v41, %v1286_v37  ;;  %v3015_v38 = vsel %vm1289_vm14, %v1290_v1, %v1291_v6  ;;  %v3018_v46 = vsel %vm1294_vm15, %v1295_v32, %v1296_v56  ;;  %v1300_v18 = vceil.f32 %v2772_v17 }
 0x13c   :  { %v1301_v9 = vfloor.f32 %v2772_v17  ;;  %vm1299_vm0 = vcmp.lt.s32.totalorder %v2772_v17, 0  ;;  %v1305_v60 = vceil.f32 %v2774_v33  ;;  %v1306_v19 = vfloor.f32 %v2774_v33 }
 0x13d   :  { %vm1304_vm1 = vcmp.lt.s32.totalorder %v2774_v33, 0  ;;  %vm1309_vm2 = vcmp.lt.s32.totalorder %v2776_v61, 0  ;;  %v1310_v1 = vceil.f32 %v2776_v61  ;;  %v1311_v17 = vfloor.f32 %v2776_v61 }
 0x13e   :  { %v3034_v6 = vsel %vm1299_vm0, %v1300_v18, %v1301_v9  ;;  %vm1314_vm3 = vcmp.lt.s32.totalorder %v2778_v63, 0  ;;  %v1315_v32 = vceil.f32 %v2778_v63  ;;  %v1316_v56 = vfloor.f32 %v2778_v63 }
 0x13f   :  { %v3039_v59 = vsel %vm1304_vm1, %v1305_v60, %v1306_v19  ;;  %vm1319_vm4 = vcmp.lt.s32.totalorder %v2780_v15, 0  ;;  %v1320_v33 = vceil.f32 %v2780_v15  ;;  %v1321_v37 = vfloor.f32 %v2780_v15 }
 0x140   :  { %v1325_v41 = vceil.f32 %v2782_v31  ;;  %v1326_v24 = vfloor.f32 %v2782_v31  ;;  %v1330_v18 = vceil.f32 %v2784_v28  ;;  %v1331_v9 = vfloor.f32 %v2784_v28 }
 0x141   :  { %vm1324_vm5 = vcmp.lt.s32.totalorder %v2782_v31, 0  ;;  %vm1329_vm6 = vcmp.lt.s32.totalorder %v2784_v28, 0  ;;  %v1335_v60 = vceil.f32 %v2786_v22  ;;  %v1336_v19 = vfloor.f32 %v2786_v22 }
 0x142   :  { %v3054_v42 = vsel %vm1309_vm2, %v1310_v1, %v1311_v17  ;;  %vm1334_vm7 = vcmp.lt.s32.totalorder %v2786_v22, 0  ;;  %v1340_v44 = vceil.f32 %v2788_v26  ;;  %v1341_v2 = vfloor.f32 %v2788_v26 }
 0x143   :  { %3900 = vst [vmem:[#allocation79_spill] sm:$0xff] %v3054_v42  ;;  %v3062_v31 = vsel %vm1314_vm3, %v1315_v32, %v1316_v56  ;;  %v3066_v28 = vsel %vm1319_vm4, %v1320_v33, %v1321_v37  ;;  %vm1339_vm8 = vcmp.lt.s32.totalorder %v2788_v26, 0  ;;  %v3069_v61 = vsel %vm1324_vm5, %v1325_v41, %v1326_v24 }
 0x144   :  { %v3071_v1 = vsel %vm1329_vm6, %v1330_v18, %v1331_v9  ;;  %v1345_v22 = vceil.f32 %v2790_v57  ;;  %v1346_v17 = vfloor.f32 %v2790_v57  ;;  %v3077_v32 = vsel %vm1334_vm7, %v1335_v60, %v1336_v19  ;;  %v3902_v19 = vld [vmem:[#allocation76_spill] sm:$0xff] }
 0x145   :  { %vm1344_vm9 = vcmp.lt.s32.totalorder %v2790_v57, 0  ;;  %v1318_v15 = vcvt.f32.s32 %v3062_v31  ;;  %v3081_v37 = vsel %vm1339_vm8, %v1340_v44, %v1341_v2  ;;  %v1350_v26 = vceil.f32 %v2792_v53  ;;  %v3901_v57 = vld [vmem:[#allocation75_spill] sm:$0xff] }
 0x146   :  { %v1351_v24 = vfloor.f32 %v2792_v53  ;;  %v1323_v41 = vcvt.f32.s32 %v3066_v28  ;;  %v1328_v56 = vcvt.f32.s32 %v3069_v61  ;;  %v1333_v33 = vcvt.f32.s32 %v3071_v1  ;;  %v3903_v1 = vld [vmem:[#allocation77_spill] sm:$0xff] }
 0x147   :  { %vm1349_vm10 = vcmp.lt.s32.totalorder %v2792_v53, 0  ;;  %v1338_v18 = vcvt.f32.s32 %v3077_v32  ;;  %v1347_v9 = vsel %vm1344_vm9, %v1345_v22, %v1346_v17  ;;  %v1355_v60 = vceil.f32 %v3901_v57  ;;  %v3904_v17 = vld [vmem:[#allocation78_spill] sm:$0xff] }
 0x148   :  { %v1356_v2 = vfloor.f32 %v3901_v57  ;;  %v1343_v44 = vcvt.f32.s32 %v3081_v37  ;;  %vm1354_vm11 = vcmp.lt.s32.totalorder %v3901_v57, 0  ;;  %v1360_v31 = vceil.f32 %v3902_v19 }
 0x149   :  { %v1361_v28 = vfloor.f32 %v3902_v19  ;;  %v1352_v61 = vsel %vm1349_vm10, %v1350_v26, %v1351_v24  ;;  %vm1359_vm12 = vcmp.lt.s32.totalorder %v3902_v19, 0  ;;  %v1365_v53 = vceil.f32 %v3903_v1 }
 0x14a   :  { %v1366_v32 = vfloor.f32 %v3903_v1  ;;  %v1348_v22 = vcvt.f32.s32 %v1347_v9  ;;  %vm1364_vm13 = vcmp.lt.s32.totalorder %v3903_v1, 0  ;;  %v1370_v63 = vceil.f32 %v3904_v17 }
 0x14b   :  { %v1371_v37 = vfloor.f32 %v3904_v17  ;;  %v1357_v20 = vsel %vm1354_vm11, %v1355_v60, %v1356_v2  ;;  %vm1369_vm14 = vcmp.lt.s32.totalorder %v3904_v17, 0  ;;  %v1375_v57 = vceil.f32 %v2845_v7 }
 0x14c   :  { %v1376_v26 = vfloor.f32 %v2845_v7  ;;  %v1362_v24 = vsel %vm1359_vm12, %v1360_v31, %v1361_v28  ;;  %vm1374_vm15 = vcmp.lt.s32.totalorder %v2845_v7, 0  ;;  %v1023_v9 = vpack.c.b16 %v1148_v35, %v1143_v50 }
 0x14d   :  { %v3905_v19 = vcvt.f32.s32 %v2836_v11  ;;  %v3906_v1 = vcvt.f32.s32 %v2840_v39  ;;  %v1353_v60 = vcvt.f32.s32 %v1352_v61  ;;  %v1367_v2 = vsel %vm1364_vm13, %v1365_v53, %v1366_v32 }
 0x14e   :  { %v3907_v17 = vcvt.f32.s32 %v2849_v55  ;;  %v3908_v16 = vcvt.f32.s32 %v2853_v48  ;;  %v3909_v31 = vcvt.f32.s32 %v2858_v43  ;;  %v3910_v7 = vcvt.f32.s32 %v2860_v23 }
 0x14f   :  { %v1024_v10 = vpack.c.b16 %v3906_v1, %v3905_v19  ;;  %v1358_v28 = vcvt.f32.s32 %v1357_v20  ;;  %v1372_v21 = vsel %vm1369_vm14, %v1370_v63, %v1371_v37  ;;  %v3911_v50 = vcvt.f32.s32 %v2868_v0 }
 0x150   :  { %v1026_v42 = vpack.c.b16 %v3908_v16, %v3907_v17  ;;  %v1027_v62 = vpack.c.b16 %v3910_v7, %v3909_v31  ;;  %v3912_v11 = vcvt.f32.s32 %v2880_v27  ;;  %v3913_v35 = vcvt.f32.s32 %v2898_v3 }
 0x151   :  { %v3914_v61 = vcvt.f32.s32 %v2905_v25  ;;  %v1363_v53 = vcvt.f32.s32 %v1362_v24  ;;  %v1377_v48 = vsel %vm1374_vm15, %v1375_v57, %v1376_v26  ;;  %v3915_v16 = vcvt.f32.s32 %v2909_v52 }
 0x152   :  { %v1029_v39 = vpack.c.b16 %v3912_v11, %v3911_v50  ;;  %v3916_v43 = vcvt.f32.s32 %v2913_v34  ;;  %v3917_v20 = vcvt.f32.s32 %v2916_v4  ;;  %v3918_v63 = vcvt.f32.s32 %v2918_v58 }
 0x153   :  { %v1030_v55 = vpack.c.b16 %v3914_v61, %v3913_v35  ;;  %v1368_v32 = vcvt.f32.s32 %v1367_v2  ;;  %v1025_v27 = vpack.c.b8 %v1024_v10, %v1023_v9  ;;  %v3919_v37 = vcvt.f32.s32 %v2922_v30 }
 0x154   :  { %v1032_v23 = vpack.c.b16 %v3916_v43, %v3915_v16  ;;  %v1033_v0 = vpack.c.b16 %v3918_v63, %v3917_v20  ;;  %v3920_v3 = vcvt.f32.s32 %v2929_v40  ;;  %v3921_v24 = vcvt.f32.s32 %v2938_v51 }
 0x155   :  { %v3922_v57 = vcvt.f32.s32 %v2942_v47  ;;  %v1373_v26 = vcvt.f32.s32 %v1372_v21  ;;  %v1028_v34 = vpack.c.b8 %v1027_v62, %v1026_v42  ;;  %v3923_v19 = vcvt.f32.s32 %v2964_v13 }
 0x156   :  { %v1035_v25 = vpack.c.b16 %v3920_v3, %v3919_v37  ;;  %v3924_v4 = vcvt.f32.s32 %v2966_v36  ;;  %v3925_v1 = vcvt.f32.s32 %v2968_v49  ;;  %v3926_v10 = vcvt.f32.s32 %v2971_v29 }
 0x157   :  { %v1036_v52 = vpack.c.b16 %v3922_v57, %v3921_v24  ;;  %v1378_v9 = vcvt.f32.s32 %v1377_v48  ;;  %v1031_v40 = vpack.c.b8 %v1030_v55, %v1029_v39  ;;  %v3927_v2 = vcvt.f32.s32 %v2976_v45 }
 0x158   :  { %v1038_v58 = vpack.c.b16 %v3924_v4, %v3923_v19  ;;  %v1039_v30 = vpack.c.b16 %v3926_v10, %v3925_v1  ;;  %v3928_v51 = vcvt.f32.s32 %v2981_v54  ;;  %v3929_v17 = vcvt.f32.s32 %v2998_v12 }
 0x159   :  { %v3930_v42 = vcvt.f32.s32 %v3006_v14  ;;  %v1034_v31 = vpack.c.b8 %v1033_v0, %v1032_v23  ;;  %v3931_v36 = vcvt.f32.s32 %v3011_v8  ;;  %v3932_v49 = vcvt.f32.s32 %v3013_v5  ;;  %v3937_v14 = vld [vmem:[#allocation79_spill] sm:$0xff] }
 0x15a   :  { %v1041_v47 = vpack.c.b16 %v3928_v51, %v3927_v2  ;;  %v3933_v29 = vcvt.f32.s32 %v3015_v38  ;;  %v3934_v62 = vcvt.f32.s32 %v3018_v46  ;;  %vm1059_vm0 = vcmask 785408  }
 0x15b   :  { %v1042_v13 = vpack.c.b16 %v3930_v42, %v3929_v17  ;;  %v1044_v7 = vpack.c.b16 %v3932_v49, %v3931_v36  ;;  %v1037_v45 = vpack.c.b8 %v1036_v52, %v1035_v25  ;;  %v3935_v54 = vcvt.f32.s32 %v3034_v6  ;;  %1060 = vst.msk [vmem:[#allocation5] sm:$0xff] %vm1059_vm0, %v1025_v27 }
 0x15c   :  { %v1045_v21 = vpack.c.b16 %v3934_v62, %v3933_v29  ;;  %v3936_v12 = vcvt.f32.s32 %v3039_v59  ;;  %v3938_v11 = vcvt.f32.s32 %v3937_v14  ;;  %v1040_v8 = vpack.c.b8 %v1039_v30, %v1038_v58  ;;  %1061 = vst.msk [vmem:[#allocation5 + $0x8] sm:$0xff] %vm1059_vm0, %v1028_v34 }
 0x15d   :  { %v1050_v5 = vpack.c.b16 %v1328_v56, %v1323_v41  ;;  %v1051_v35 = vpack.c.b16 %v1338_v18, %v1333_v33  ;;  %v1043_v38 = vpack.c.b8 %v1042_v13, %v1041_v47  ;;  %v1053_v46 = vpack.c.b16 %v1348_v22, %v1343_v44  ;;  %1062 = vst.msk [vmem:[#allocation5 + $0x10] sm:$0xff] %vm1059_vm0, %v1031_v40 }
 0x15e   :  { %v1047_v50 = vpack.c.b16 %v3936_v12, %v3935_v54  ;;  %v1048_v39 = vpack.c.b16 %v1318_v15, %v3938_v11  ;;  %v1054_v61 = vpack.c.b16 %v1358_v28, %v1353_v60  ;;  %v1046_v55 = vpack.c.b8 %v1045_v21, %v1044_v7  ;;  %1063 = vst.msk [vmem:[#allocation5 + $0x18] sm:$0xff] %vm1059_vm0, %v1034_v31 }
 0x15f   :  { %v1056_v6 = vpack.c.b16 %v1368_v32, %v1363_v53  ;;  %v1057_v48 = vpack.c.b16 %v1378_v9, %v1373_v26  ;;  %1064 = vst.msk [vmem:[#allocation5 + $0x20] sm:$0xff] %vm1059_vm0, %v1037_v45  ;;  %v1052_v15 = vpack.c.b8 %v1051_v35, %v1050_v5 }
 0x160   :  { %v1049_v59 = vpack.c.b8 %v1048_v39, %v1047_v50  ;;  %1065 = vst.msk [vmem:[#allocation5 + $0x28] sm:$0xff] %vm1059_vm0, %v1040_v8  ;;  %v1055_v41 = vpack.c.b8 %v1054_v61, %v1053_v46 }
 0x161   :  { %1066 = vst.msk [vmem:[#allocation5 + $0x30] sm:$0xff] %vm1059_vm0, %v1043_v38  ;;  %v1058_v56 = vpack.c.b8 %v1057_v48, %v1056_v6 }
 0x162   :  { %1067 = vst.msk [vmem:[#allocation5 + $0x38] sm:$0xff] %vm1059_vm0, %v1046_v55 }
 0x163   :  { %1068 = vst.msk [vmem:[#allocation5 + $0x40] sm:$0xff] %vm1059_vm0, %v1049_v59 }
 0x164   :  { %1069 = vst.msk [vmem:[#allocation5 + $0x48] sm:$0xff] %vm1059_vm0, %v1052_v15 }
 0x165   :  { %1070 = vst.msk [vmem:[#allocation5 + $0x50] sm:$0xff] %vm1059_vm0, %v1055_v41 }
 0x166   :  { %1071 = vst.msk [vmem:[#allocation5 + $0x58] sm:$0xff] %vm1059_vm0, %v1058_v56 }
 0x167   :  { %1084 = dma.vmem_to_hbm [thread:$0]  %s1077_s13, 1536, %s1079_s16, [#allocation4], %s1436_s11, %s1436_s11, %s1437_s12  }
 0x168   :  { %1433 = dma.done.wait [#allocation4], 1536  }
 0x169   :  { %1434 = vsyncadd [#allocation4], 4294965760 }
 0x16a   :  { %1089 = vsyncpa [#allocation3], 1 }
 0x16b   :  { %1090 = vsyncpa [#allocation4], 1 }

</bundles_post_ra>
